<compile_context>
chip_gen: v7x
topology: tpu7x:2x2x1
jax: 0.10.0
libtpu: 0.0.40
codegen_flags: <defaults>
</compile_context>

<pallas_src>
import functools
import math

import jax
import jax.numpy as jnp
from jax.experimental import pallas as pl
from jax.experimental.pallas import tpu as pltpu


# ---------------------------------------------------------------------------
# tanh-form GELU: transcendental on the EUP slot, ~2x less VALU work than an
# erf polynomial.  |err| vs exact erf-GELU < ~5e-4, concentrated at |x|~2-3.
# ---------------------------------------------------------------------------
_GELU_C = 0.7978845608028654  # sqrt(2/pi)


def _gelu_tanh(x):
    return 0.5 * x * (1.0 + jnp.tanh(_GELU_C * (x + 0.044715 * x * x * x)))


# ---------------------------------------------------------------------------
# Pallas kernel: whole forward pass for Bt batch images per grid step.
# Layout inside the kernel: rows = channels, lanes = H*W (lane-dense).
# Parameters arrive as two packed slabs (BN already folded by the wrapper):
#   slab A (C rows):  [ w2*s3 (2C) | w_dw*s1 (9) | b1 | b3 | wa1^T (C/4)
#                       | wa2 (C/4) | ba2 | ba1-row-block (C/4, row 0 only) ]
#   slab B (2C rows): [ w1*s2 (C) | b2 ]
# ---------------------------------------------------------------------------
def _adaptor_kernel(x_ref, wA_ref, wB_ref, o_ref, *, C, H, W):
    R, HW = x_ref.shape
    Bt = R // C
    C2, C4 = 2 * C, C // 4

    # static slab-A column offsets (must match wrapper concatenation order)
    o_dw = C2
    o_b1 = o_dw + 9
    o_b3 = o_b1 + 1
    o_wa1 = o_b3 + 1
    o_wa2 = o_wa1 + C4
    o_ba2 = o_wa2 + C4
    o_ba1 = o_ba2 + 1

    w2 = wA_ref[:, 0:C2]                       # (C, 2C)   BN3 scale folded
    wdw = wA_ref[:, o_dw:o_dw + 9]             # (C, 9)    BN1 scale folded
    b1 = wA_ref[:, o_b1:o_b1 + 1]              # (C, 1)
    b3 = wA_ref[:, o_b3:o_b3 + 1]              # (C, 1)
    wa1t = wA_ref[:, o_wa1:o_wa1 + C4]         # (C, C/4)
    wa2 = wA_ref[:, o_wa2:o_wa2 + C4]          # (C, C/4)
    ba2 = wA_ref[:, o_ba2:o_ba2 + 1]           # (C, 1)
    ba1 = wA_ref[0:1, o_ba1:o_ba1 + C4]        # (1, C/4)

    w1 = wB_ref[:, 0:C]                        # (2C, C)   BN2 scale folded
    b2 = wB_ref[:, C:C + 1]                    # (2C, 1)

    # (1, HW) boundary masks for the depthwise conv; broadcast against (C, HW)
    pos = jax.lax.broadcasted_iota(jnp.int32, (1, HW), 1)
    if W & (W - 1) == 0:
        w_pos = jnp.bitwise_and(pos, W - 1)
    else:
        w_pos = jax.lax.rem(pos, W)
    hmask = {-1: pos >= W, 0: None, 1: pos < (H - 1) * W}
    wmask = {-1: w_pos >= 1, 0: None, 1: w_pos <= W - 2}

    # Per-image processing keeps the live set at (C, HW) scale.  Bt is
    # normally 1 (grid carries the batch), so this loop rarely unrolls.
    for b in range(Bt):
        rows = slice(b * C, (b + 1) * C)
        x_b = x_ref[rows, :]                                       # (C, HW)

        # ---- spatial block: depthwise 3x3 (zero pad) + folded BN1 + GELU ----
        y = x_b * wdw[:, 4:5]                                      # centre tap
        for dh in (-1, 0, 1):
            for dw in (-1, 0, 1):
                if dh == 0 and dw == 0:
                    continue
                shift = (-(dh * W + dw)) % HW
                v = pltpu.roll(x_b, shift, 1)    # v[:, p] = x[:, p + dh*W + dw]
                m = hmask[dh]
                if wmask[dw] is not None:
                    m = wmask[dw] if m is None else jnp.logical_and(m, wmask[dw])
                tap = 3 * (dh + 1) + (dw + 1)
                y = y + jnp.where(m, v, 0.0) * wdw[:, tap:tap + 1]
        y = _gelu_tanh(y + b1)

        # ---- channel block: two 1x1 convs on the MXU (f32 accumulation) ----
        z1 = _gelu_tanh(jnp.dot(w1, y, preferred_element_type=jnp.float32) + b2)
        z2 = jnp.dot(w2, z1, preferred_element_type=jnp.float32) + b3  # (C, HW)

        # ---- attention: GAP -> 1x1(+b) -> GELU -> 1x1(+b) -> sigmoid ----
        # (kept on VPU/XLU: broadcast-multiply + reduce, off the MXU path)
        pooled = jnp.mean(z2, axis=1, keepdims=True)                   # (C, 1)
        a = _gelu_tanh(jnp.sum(wa1t * pooled, axis=0, keepdims=True) + ba1)
        att = jnp.sum(wa2 * a, axis=1, keepdims=True) + ba2            # (C, 1)
        gain = 1.0 + jax.nn.sigmoid(att)

        # ---- residual add (re-read x from the ref); Dropout2d is identity ----
        # TODO(synk): training-mode Dropout2d (stochastic channel drop) not modeled.
        o_ref[rows, :] = (z2 * gain + x_ref[rows, :]).astype(o_ref.dtype)


# ---------------------------------------------------------------------------
# Batch tiling: keep >= min(B, 4) grid steps (DMA/compute overlap + v7x
# megacore sharding) while keeping blocks small and 8-aligned row counts.
# ---------------------------------------------------------------------------
def _pick_batch_tile(B, C, HW):
    target_steps = min(B, 4)
    budget_bytes = 4 << 20                     # conservative per-block budget
    divisors = [d for d in range(1, B + 1) if B % d == 0]

    def rows_ok(d):
        return ((d * C) % 8 == 0) or (d == B)

    cands = [d for d in divisors
             if rows_ok(d) and B // d >= target_steps
             and d * C * HW * 4 <= budget_bytes]
    if cands:
        return max(cands)
    cands = [d for d in divisors if rows_ok(d) and d * C * HW * 4 <= budget_bytes]
    if cands:
        return min(cands)
    return B


# ---------------------------------------------------------------------------
# Wrapper: NCHW interface, BN folding, parameter packing, pallas_call.
# ---------------------------------------------------------------------------
@jax.jit
def event_adaptor_attention(x_nchw, params):
    B, C, H, W = x_nchw.shape
    HW = H * W
    C2, C4 = 2 * C, C // 4
    Bt = _pick_batch_tile(B, C, HW)

    # native NCHW order viewed 2-D: rows = (batch, channel), lanes = H*W
    x2d = x_nchw.reshape(B * C, HW).astype(jnp.float32)

    s1, b1 = params["bn1_scale"], params["bn1_bias"]
    s2, b2 = params["bn2_scale"], params["bn2_bias"]
    s3, b3 = params["bn3_scale"], params["bn3_bias"]

    ba1_block = jnp.zeros((C, C4), jnp.float32).at[0, :].set(params["ba1"])

    # packed parameter slabs (2 inputs instead of 10 tiny DMAs)
    slab_a = jnp.concatenate([
        params["w2"] * s3[:, None],                     # (C, 2C)
        params["w_dw"].reshape(C, 9) * s1[:, None],     # (C, 9)
        b1[:, None],                                    # (C, 1)
        b3[:, None],                                    # (C, 1)
        params["wa1"].T,                                # (C, C/4)
        params["wa2"],                                  # (C, C/4)
        params["ba2"][:, None],                         # (C, 1)
        ba1_block,                                      # (C, C/4) row 0 valid
    ], axis=1).astype(jnp.float32)

    slab_b = jnp.concatenate([
        params["w1"] * s2[:, None],                     # (2C, C)
        b2[:, None],                                    # (2C, 1)
    ], axis=1).astype(jnp.float32)

    kernel = functools.partial(_adaptor_kernel, C=C, H=H, W=W)

    block_bytes = Bt * C * HW * 4
    vmem_limit = int(min(96 << 20, max(32 << 20, 8 * block_bytes)))

    out = pl.pallas_call(
        kernel,
        out_shape=jax.ShapeDtypeStruct((B * C, HW), jnp.float32),
        grid_spec=pltpu.PrefetchScalarGridSpec(
            num_scalar_prefetch=0,
            grid=(B // Bt,),
            in_specs=[
                pl.BlockSpec((Bt * C, HW), lambda b: (b, 0)),
                pl.BlockSpec(slab_a.shape, lambda b: (0, 0)),   # resident
                pl.BlockSpec(slab_b.shape, lambda b: (0, 0)),   # resident
            ],
            out_specs=pl.BlockSpec((Bt * C, HW), lambda b: (b, 0)),
        ),
        compiler_params=pltpu.CompilerParams(
            dimension_semantics=("parallel",),
            vmem_limit_bytes=vmem_limit),
    )(x2d, slab_a, slab_b)
    return out.reshape(B, C, H, W)


# ---------------------------------------------------------------------------
# Deterministic parameter construction mirroring the module's __init__.
# BatchNorms are eval-mode (running_mean=0, running_var=1, gamma=1, beta=0).
# ---------------------------------------------------------------------------
def _bn_fold(C, eps=1e-5):
    gamma = jnp.ones((C,), jnp.float32)
    beta = jnp.zeros((C,), jnp.float32)
    mean = jnp.zeros((C,), jnp.float32)
    var = jnp.ones((C,), jnp.float32)
    scale = gamma / jnp.sqrt(var + eps)
    bias = beta - mean * scale
    return scale, bias


def init_params(key, C):
    assert C % 4 == 0
    C2, C4 = 2 * C, C // 4
    ks = jax.random.split(key, 5)

    def he(kk, shape, fan_out):          # kaiming_normal_, mode='fan_out', relu
        return jax.random.normal(kk, shape, jnp.float32) * math.sqrt(2.0 / fan_out)

    s1, b1 = _bn_fold(C)
    s2, b2 = _bn_fold(C2)
    s3, b3 = _bn_fold(C)

    return dict(
        w_dw=he(ks[0], (C, 3, 3), C * 9),           # depthwise 3x3 (C,1,3,3) squeezed
        bn1_scale=s1, bn1_bias=b1,
        w1=he(ks[1], (C2, C), C2),                  # 1x1, C -> 2C   (out, in)
        bn2_scale=s2, bn2_bias=b2,
        w2=he(ks[2], (C, C2), C),                   # 1x1, 2C -> C
        bn3_scale=s3, bn3_bias=b3,
        wa1=he(ks[3], (C4, C), C4), ba1=jnp.zeros((C4,), jnp.float32),
        wa2=he(ks[4], (C, C4), C), ba2=jnp.zeros((C,), jnp.float32),
    )


# ---------------------------------------------------------------------------
# Pure-JAX reference using the EXACT (erf) GELU, matching torch nn.GELU().
# ---------------------------------------------------------------------------
def _reference(x, p):
    B, C, H, W = x.shape
    gelu = lambda v: jax.nn.gelu(v, approximate=False)
    xpad = jnp.pad(x, ((0, 0), (0, 0), (1, 1), (1, 1)))
    y = jnp.zeros_like(x)
    for i in range(3):
        for j in range(3):
            y = y + xpad[:, :, i:i + H, j:j + W] * p["w_dw"][None, :, i, j, None, None]
    y = gelu(y * p["bn1_scale"][None, :, None, None]
             + p["bn1_bias"][None, :, None, None])
    hp = jax.lax.Precision.HIGHEST
    z = jnp.einsum("dc,bchw->bdhw", p["w1"], y, precision=hp)
    z = gelu(z * p["bn2_scale"][None, :, None, None]
             + p["bn2_bias"][None, :, None, None])
    z = jnp.einsum("cd,bdhw->bchw", p["w2"], z, precision=hp)
    z = z * p["bn3_scale"][None, :, None, None] + p["bn3_bias"][None, :, None, None]
    pooled = jnp.mean(z, axis=(2, 3))                               # (B, C)
    a = gelu(pooled @ p["wa1"].T + p["ba1"][None, :])
    att = jax.nn.sigmoid(a @ p["wa2"].T + p["ba2"][None, :])
    z = z * (1.0 + att[:, :, None, None])
    return z + x


if __name__ == "__main__":
    key = jax.random.PRNGKey(0)
    k_x, k_p = jax.random.split(key)
    B, C, H, W = 2, 32, 16, 16            # feature_channels = 32
    x = jax.random.normal(k_x, (B, C, H, W), jnp.float32)
    params = init_params(k_p, C)

    out = jax.block_until_ready(event_adaptor_attention(x, params))

    ref = _reference(x, params)
    max_err = float(jnp.max(jnp.abs(out - ref)))
    assert out.shape == (B, C, H, W)
    assert max_err < 2e-3, f"max abs err {max_err}"
    print("KERNEL_OK")
</pallas_src>

<mosaic_0001>
module attributes {stable_mosaic.version = 11 : i64} {
  func.func @_adaptor_kernel(%arg0: i32, %arg1: memref<32x256xf32, #tpu.memory_space<vmem>>, %arg2: memref<32x100xf32, #tpu.memory_space<vmem>>, %arg3: memref<64x33xf32, #tpu.memory_space<vmem>>, %arg4: memref<32x256xf32, #tpu.memory_space<vmem>>) attributes {dimension_semantics = [#tpu.dimension_semantics<parallel>], iteration_bounds = array<i64: 2>, scalar_prefetch = 0 : i64, scratch_operands = 0 : i64, tpu.core_type = #tpu.core_type<tc>, window_params = [{transform_indices = @transform_0, window_bounds = array<i64: 32, 256>}, {pipeline_mode = #tpu.pipeline_mode<synchronous>, transform_indices = @transform_1, window_bounds = array<i64: 32, 100>}, {pipeline_mode = #tpu.pipeline_mode<synchronous>, transform_indices = @transform_2, window_bounds = array<i64: 64, 33>}, {transform_indices = @transform_3, window_bounds = array<i64: 32, 256>}]} {
    %c0 = arith.constant 0 : index
    %c0_0 = arith.constant 0 : index
    %0 = vector.load %arg2[%c0, %c0_0] : memref<32x100xf32, #tpu.memory_space<vmem>>, vector<32x64xf32>
    %c0_1 = arith.constant 0 : index
    %c64 = arith.constant 64 : index
    %1 = vector.load %arg2[%c0_1, %c64] : memref<32x100xf32, #tpu.memory_space<vmem>>, vector<32x9xf32>
    %c0_2 = arith.constant 0 : index
    %c73 = arith.constant 73 : index
    %2 = vector.load %arg2[%c0_2, %c73] : memref<32x100xf32, #tpu.memory_space<vmem>>, vector<32x1xf32>
    %c0_3 = arith.constant 0 : index
    %c74 = arith.constant 74 : index
    %3 = vector.load %arg2[%c0_3, %c74] : memref<32x100xf32, #tpu.memory_space<vmem>>, vector<32x1xf32>
    %c0_4 = arith.constant 0 : index
    %c75 = arith.constant 75 : index
    %4 = vector.load %arg2[%c0_4, %c75] : memref<32x100xf32, #tpu.memory_space<vmem>>, vector<32x8xf32>
    %c0_5 = arith.constant 0 : index
    %c83 = arith.constant 83 : index
    %5 = vector.load %arg2[%c0_5, %c83] : memref<32x100xf32, #tpu.memory_space<vmem>>, vector<32x8xf32>
    %c0_6 = arith.constant 0 : index
    %c91 = arith.constant 91 : index
    %6 = vector.load %arg2[%c0_6, %c91] : memref<32x100xf32, #tpu.memory_space<vmem>>, vector<32x1xf32>
    %c0_7 = arith.constant 0 : index
    %c92 = arith.constant 92 : index
    %7 = vector.load %arg2[%c0_7, %c92] : memref<32x100xf32, #tpu.memory_space<vmem>>, vector<1x8xf32>
    %c0_8 = arith.constant 0 : index
    %c0_9 = arith.constant 0 : index
    %8 = vector.load %arg3[%c0_8, %c0_9] : memref<64x33xf32, #tpu.memory_space<vmem>>, vector<64x32xf32>
    %c0_10 = arith.constant 0 : index
    %c32 = arith.constant 32 : index
    %9 = vector.load %arg3[%c0_10, %c32] : memref<64x33xf32, #tpu.memory_space<vmem>>, vector<64x1xf32>
    %10 = tpu.iota {dimensions = array<i32: 1>} : vector<1x256xi32>
    %c15_i32 = arith.constant 15 : i32
    %11 = vector.broadcast %c15_i32 : i32 to vector<1x256xi32>
    %12 = arith.andi %10, %11 : vector<1x256xi32>
    %c16_i32 = arith.constant 16 : i32
    %13 = vector.broadcast %c16_i32 : i32 to vector<1x256xi32>
    %14 = arith.cmpi sge, %10, %13 : vector<1x256xi32>
    %c240_i32 = arith.constant 240 : i32
    %15 = vector.broadcast %c240_i32 : i32 to vector<1x256xi32>
    %16 = arith.cmpi slt, %10, %15 : vector<1x256xi32>
    %c1_i32 = arith.constant 1 : i32
    %17 = vector.broadcast %c1_i32 : i32 to vector<1x256xi32>
    %18 = arith.cmpi sge, %12, %17 : vector<1x256xi32>
    %c14_i32 = arith.constant 14 : i32
    %19 = vector.broadcast %c14_i32 : i32 to vector<1x256xi32>
    %20 = arith.cmpi sle, %12, %19 : vector<1x256xi32>
    %c0_11 = arith.constant 0 : index
    %c0_12 = arith.constant 0 : index
    %21 = vector.load %arg1[%c0_11, %c0_12] : memref<32x256xf32, #tpu.memory_space<vmem>>, vector<32x256xf32>
    %22 = vector.extract_strided_slice %1 {offsets = [0, 4], sizes = [32, 1], strides = [1, 1]} : vector<32x9xf32> to vector<32x1xf32>
    %23 = vector.broadcast %22 : vector<32x1xf32> to vector<32x256xf32>
    %24 = arith.mulf %21, %23 : vector<32x256xf32>
    %c17_i32 = arith.constant 17 : i32
    %25 = tpu.dynamic_rotate %21 by %c17_i32 dim 1 : vector<32x256xf32>, i32 -> vector<32x256xf32>
    %26 = arith.andi %14, %18 : vector<1x256xi1>
    %cst = arith.constant 0.000000e+00 : f32
    %27 = vector.shape_cast %26 : vector<1x256xi1> to vector<1x256xi1>
    %28 = vector.broadcast %27 : vector<1x256xi1> to vector<32x256xi1>
    %29 = vector.broadcast %cst : f32 to vector<32x256xf32>
    %30 = arith.select %28, %25, %29 : vector<32x256xi1>, vector<32x256xf32>
    %31 = vector.extract_strided_slice %1 {offsets = [0, 0], sizes = [32, 1], strides = [1, 1]} : vector<32x9xf32> to vector<32x1xf32>
    %32 = vector.broadcast %31 : vector<32x1xf32> to vector<32x256xf32>
    %33 = arith.mulf %30, %32 : vector<32x256xf32>
    %34 = arith.addf %24, %33 : vector<32x256xf32>
    %c16_i32_13 = arith.constant 16 : i32
    %35 = tpu.dynamic_rotate %21 by %c16_i32_13 dim 1 : vector<32x256xf32>, i32 -> vector<32x256xf32>
    %cst_14 = arith.constant 0.000000e+00 : f32
    %36 = vector.shape_cast %14 : vector<1x256xi1> to vector<1x256xi1>
    %37 = vector.broadcast %36 : vector<1x256xi1> to vector<32x256xi1>
    %38 = vector.broadcast %cst_14 : f32 to vector<32x256xf32>
    %39 = arith.select %37, %35, %38 : vector<32x256xi1>, vector<32x256xf32>
    %40 = vector.extract_strided_slice %1 {offsets = [0, 1], sizes = [32, 1], strides = [1, 1]} : vector<32x9xf32> to vector<32x1xf32>
    %41 = vector.broadcast %40 : vector<32x1xf32> to vector<32x256xf32>
    %42 = arith.mulf %39, %41 : vector<32x256xf32>
    %43 = arith.addf %34, %42 : vector<32x256xf32>
    %c15_i32_15 = arith.constant 15 : i32
    %44 = tpu.dynamic_rotate %21 by %c15_i32_15 dim 1 : vector<32x256xf32>, i32 -> vector<32x256xf32>
    %45 = arith.andi %14, %20 : vector<1x256xi1>
    %cst_16 = arith.constant 0.000000e+00 : f32
    %46 = vector.shape_cast %45 : vector<1x256xi1> to vector<1x256xi1>
    %47 = vector.broadcast %46 : vector<1x256xi1> to vector<32x256xi1>
    %48 = vector.broadcast %cst_16 : f32 to vector<32x256xf32>
    %49 = arith.select %47, %44, %48 : vector<32x256xi1>, vector<32x256xf32>
    %50 = vector.extract_strided_slice %1 {offsets = [0, 2], sizes = [32, 1], strides = [1, 1]} : vector<32x9xf32> to vector<32x1xf32>
    %51 = vector.broadcast %50 : vector<32x1xf32> to vector<32x256xf32>
    %52 = arith.mulf %49, %51 : vector<32x256xf32>
    %53 = arith.addf %43, %52 : vector<32x256xf32>
    %c1_i32_17 = arith.constant 1 : i32
    %54 = tpu.dynamic_rotate %21 by %c1_i32_17 dim 1 : vector<32x256xf32>, i32 -> vector<32x256xf32>
    %cst_18 = arith.constant 0.000000e+00 : f32
    %55 = vector.shape_cast %18 : vector<1x256xi1> to vector<1x256xi1>
    %56 = vector.broadcast %55 : vector<1x256xi1> to vector<32x256xi1>
    %57 = vector.broadcast %cst_18 : f32 to vector<32x256xf32>
    %58 = arith.select %56, %54, %57 : vector<32x256xi1>, vector<32x256xf32>
    %59 = vector.extract_strided_slice %1 {offsets = [0, 3], sizes = [32, 1], strides = [1, 1]} : vector<32x9xf32> to vector<32x1xf32>
    %60 = vector.broadcast %59 : vector<32x1xf32> to vector<32x256xf32>
    %61 = arith.mulf %58, %60 : vector<32x256xf32>
    %62 = arith.addf %53, %61 : vector<32x256xf32>
    %c255_i32 = arith.constant 255 : i32
    %63 = tpu.dynamic_rotate %21 by %c255_i32 dim 1 : vector<32x256xf32>, i32 -> vector<32x256xf32>
    %cst_19 = arith.constant 0.000000e+00 : f32
    %64 = vector.shape_cast %20 : vector<1x256xi1> to vector<1x256xi1>
    %65 = vector.broadcast %64 : vector<1x256xi1> to vector<32x256xi1>
    %66 = vector.broadcast %cst_19 : f32 to vector<32x256xf32>
    %67 = arith.select %65, %63, %66 : vector<32x256xi1>, vector<32x256xf32>
    %68 = vector.extract_strided_slice %1 {offsets = [0, 5], sizes = [32, 1], strides = [1, 1]} : vector<32x9xf32> to vector<32x1xf32>
    %69 = vector.broadcast %68 : vector<32x1xf32> to vector<32x256xf32>
    %70 = arith.mulf %67, %69 : vector<32x256xf32>
    %71 = arith.addf %62, %70 : vector<32x256xf32>
    %c241_i32 = arith.constant 241 : i32
    %72 = tpu.dynamic_rotate %21 by %c241_i32 dim 1 : vector<32x256xf32>, i32 -> vector<32x256xf32>
    %73 = arith.andi %16, %18 : vector<1x256xi1>
    %cst_20 = arith.constant 0.000000e+00 : f32
    %74 = vector.shape_cast %73 : vector<1x256xi1> to vector<1x256xi1>
    %75 = vector.broadcast %74 : vector<1x256xi1> to vector<32x256xi1>
    %76 = vector.broadcast %cst_20 : f32 to vector<32x256xf32>
    %77 = arith.select %75, %72, %76 : vector<32x256xi1>, vector<32x256xf32>
    %78 = vector.extract_strided_slice %1 {offsets = [0, 6], sizes = [32, 1], strides = [1, 1]} : vector<32x9xf32> to vector<32x1xf32>
    %79 = vector.broadcast %78 : vector<32x1xf32> to vector<32x256xf32>
    %80 = arith.mulf %77, %79 : vector<32x256xf32>
    %81 = arith.addf %71, %80 : vector<32x256xf32>
    %c240_i32_21 = arith.constant 240 : i32
    %82 = tpu.dynamic_rotate %21 by %c240_i32_21 dim 1 : vector<32x256xf32>, i32 -> vector<32x256xf32>
    %cst_22 = arith.constant 0.000000e+00 : f32
    %83 = vector.shape_cast %16 : vector<1x256xi1> to vector<1x256xi1>
    %84 = vector.broadcast %83 : vector<1x256xi1> to vector<32x256xi1>
    %85 = vector.broadcast %cst_22 : f32 to vector<32x256xf32>
    %86 = arith.select %84, %82, %85 : vector<32x256xi1>, vector<32x256xf32>
    %87 = vector.extract_strided_slice %1 {offsets = [0, 7], sizes = [32, 1], strides = [1, 1]} : vector<32x9xf32> to vector<32x1xf32>
    %88 = vector.broadcast %87 : vector<32x1xf32> to vector<32x256xf32>
    %89 = arith.mulf %86, %88 : vector<32x256xf32>
    %90 = arith.addf %81, %89 : vector<32x256xf32>
    %c239_i32 = arith.constant 239 : i32
    %91 = tpu.dynamic_rotate %21 by %c239_i32 dim 1 : vector<32x256xf32>, i32 -> vector<32x256xf32>
    %92 = arith.andi %16, %20 : vector<1x256xi1>
    %cst_23 = arith.constant 0.000000e+00 : f32
    %93 = vector.shape_cast %92 : vector<1x256xi1> to vector<1x256xi1>
    %94 = vector.broadcast %93 : vector<1x256xi1> to vector<32x256xi1>
    %95 = vector.broadcast %cst_23 : f32 to vector<32x256xf32>
    %96 = arith.select %94, %91, %95 : vector<32x256xi1>, vector<32x256xf32>
    %97 = vector.extract_strided_slice %1 {offsets = [0, 8], sizes = [32, 1], strides = [1, 1]} : vector<32x9xf32> to vector<32x1xf32>
    %98 = vector.broadcast %97 : vector<32x1xf32> to vector<32x256xf32>
    %99 = arith.mulf %96, %98 : vector<32x256xf32>
    %100 = arith.addf %90, %99 : vector<32x256xf32>
    %101 = vector.broadcast %2 : vector<32x1xf32> to vector<32x256xf32>
    %102 = arith.addf %100, %101 : vector<32x256xf32>
    %cst_24 = arith.constant 5.000000e-01 : f32
    %103 = vector.broadcast %cst_24 : f32 to vector<32x256xf32>
    %104 = arith.mulf %103, %102 : vector<32x256xf32>
    %cst_25 = arith.constant 4.471500e-02 : f32
    %105 = vector.broadcast %cst_25 : f32 to vector<32x256xf32>
    %106 = arith.mulf %105, %102 : vector<32x256xf32>
    %107 = arith.mulf %106, %102 : vector<32x256xf32>
    %108 = arith.mulf %107, %102 : vector<32x256xf32>
    %109 = arith.addf %102, %108 : vector<32x256xf32>
    %cst_26 = arith.constant 0.797884583 : f32
    %110 = vector.broadcast %cst_26 : f32 to vector<32x256xf32>
    %111 = arith.mulf %110, %109 : vector<32x256xf32>
    %112 = math.tanh %111 : vector<32x256xf32>
    %cst_27 = arith.constant 1.000000e+00 : f32
    %113 = vector.broadcast %cst_27 : f32 to vector<32x256xf32>
    %114 = arith.addf %113, %112 : vector<32x256xf32>
    %115 = arith.mulf %104, %114 : vector<32x256xf32>
    %cst_28 = arith.constant dense<0.000000e+00> : vector<64x256xf32>
    %116 = tpu.matmul %8, %115, %cst_28 {dimension_numbers = #tpu.dot_dimension_numbers<[1], [0], [0], [1], [0, 0, 1, 1], [], []>} : vector<64x32xf32>, vector<32x256xf32>, vector<64x256xf32> -> vector<64x256xf32>
    %117 = vector.broadcast %9 : vector<64x1xf32> to vector<64x256xf32>
    %118 = arith.addf %116, %117 : vector<64x256xf32>
    %cst_29 = arith.constant 5.000000e-01 : f32
    %119 = vector.broadcast %cst_29 : f32 to vector<64x256xf32>
    %120 = arith.mulf %119, %118 : vector<64x256xf32>
    %cst_30 = arith.constant 4.471500e-02 : f32
    %121 = vector.broadcast %cst_30 : f32 to vector<64x256xf32>
    %122 = arith.mulf %121, %118 : vector<64x256xf32>
    %123 = arith.mulf %122, %118 : vector<64x256xf32>
    %124 = arith.mulf %123, %118 : vector<64x256xf32>
    %125 = arith.addf %118, %124 : vector<64x256xf32>
    %cst_31 = arith.constant 0.797884583 : f32
    %126 = vector.broadcast %cst_31 : f32 to vector<64x256xf32>
    %127 = arith.mulf %126, %125 : vector<64x256xf32>
    %128 = math.tanh %127 : vector<64x256xf32>
    %cst_32 = arith.constant 1.000000e+00 : f32
    %129 = vector.broadcast %cst_32 : f32 to vector<64x256xf32>
    %130 = arith.addf %129, %128 : vector<64x256xf32>
    %131 = arith.mulf %120, %130 : vector<64x256xf32>
    %cst_33 = arith.constant dense<0.000000e+00> : vector<32x256xf32>
    %132 = tpu.matmul %0, %131, %cst_33 {dimension_numbers = #tpu.dot_dimension_numbers<[1], [0], [0], [1], [0, 0, 1, 1], [], []>} : vector<32x64xf32>, vector<64x256xf32>, vector<32x256xf32> -> vector<32x256xf32>
    %133 = vector.broadcast %3 : vector<32x1xf32> to vector<32x256xf32>
    %134 = arith.addf %132, %133 : vector<32x256xf32>
    %cst_34 = arith.constant dense<0.000000e+00> : vector<32xf32>
    %135 = vector.multi_reduction <add>, %134, %cst_34 [1] : vector<32x256xf32> to vector<32xf32>
    %136 = vector.shape_cast %135 : vector<32xf32> to vector<32x1xf32>
    %cst_35 = arith.constant 2.560000e+02 : f32
    %137 = vector.broadcast %cst_35 : f32 to vector<32x1xf32>
    %138 = arith.divf %136, %137 : vector<32x1xf32>
    %139 = vector.broadcast %138 : vector<32x1xf32> to vector<32x8xf32>
    %140 = arith.mulf %4, %139 : vector<32x8xf32>
    %cst_36 = arith.constant dense<0.000000e+00> : vector<8xf32>
    %141 = vector.multi_reduction <add>, %140, %cst_36 [0] : vector<32x8xf32> to vector<8xf32>
    %142 = vector.shape_cast %141 : vector<8xf32> to vector<1x8xf32>
    %143 = arith.addf %142, %7 : vector<1x8xf32>
    %cst_37 = arith.constant 5.000000e-01 : f32
    %144 = vector.broadcast %cst_37 : f32 to vector<1x8xf32>
    %145 = arith.mulf %144, %143 : vector<1x8xf32>
    %cst_38 = arith.constant 4.471500e-02 : f32
    %146 = vector.broadcast %cst_38 : f32 to vector<1x8xf32>
    %147 = arith.mulf %146, %143 : vector<1x8xf32>
    %148 = arith.mulf %147, %143 : vector<1x8xf32>
    %149 = arith.mulf %148, %143 : vector<1x8xf32>
    %150 = arith.addf %143, %149 : vector<1x8xf32>
    %cst_39 = arith.constant 0.797884583 : f32
    %151 = vector.broadcast %cst_39 : f32 to vector<1x8xf32>
    %152 = arith.mulf %151, %150 : vector<1x8xf32>
    %153 = math.tanh %152 : vector<1x8xf32>
    %cst_40 = arith.constant 1.000000e+00 : f32
    %154 = vector.broadcast %cst_40 : f32 to vector<1x8xf32>
    %155 = arith.addf %154, %153 : vector<1x8xf32>
    %156 = arith.mulf %145, %155 : vector<1x8xf32>
    %157 = vector.broadcast %156 : vector<1x8xf32> to vector<32x8xf32>
    %158 = arith.mulf %5, %157 : vector<32x8xf32>
    %cst_41 = arith.constant dense<0.000000e+00> : vector<32xf32>
    %159 = vector.multi_reduction <add>, %158, %cst_41 [1] : vector<32x8xf32> to vector<32xf32>
    %160 = vector.shape_cast %159 : vector<32xf32> to vector<32x1xf32>
    %161 = arith.addf %160, %6 : vector<32x1xf32>
    %162 = arith.negf %161 : vector<32x1xf32>
    %163 = math.exp %162 : vector<32x1xf32>
    %cst_42 = arith.constant 1.000000e+00 : f32
    %164 = vector.broadcast %cst_42 : f32 to vector<32x1xf32>
    %165 = arith.addf %164, %163 : vector<32x1xf32>
    %166 = arith.divf %164, %165 : vector<32x1xf32>
    %cst_43 = arith.constant 1.000000e+00 : f32
    %167 = vector.broadcast %cst_43 : f32 to vector<32x1xf32>
    %168 = arith.addf %167, %166 : vector<32x1xf32>
    %169 = vector.broadcast %168 : vector<32x1xf32> to vector<32x256xf32>
    %170 = arith.mulf %134, %169 : vector<32x256xf32>
    %c0_44 = arith.constant 0 : index
    %c0_45 = arith.constant 0 : index
    %171 = vector.load %arg1[%c0_44, %c0_45] : memref<32x256xf32, #tpu.memory_space<vmem>>, vector<32x256xf32>
    %172 = arith.addf %170, %171 : vector<32x256xf32>
    %c0_46 = arith.constant 0 : index
    %c0_47 = arith.constant 0 : index
    %173 = vector.load %arg4[%c0_46, %c0_47] : memref<32x256xf32, #tpu.memory_space<vmem>>, vector<32x256xf32>
    tpu.vector_store %arg4[%c0_46, %c0_47], %172 {strides = array<i32>} : memref<32x256xf32, #tpu.memory_space<vmem>>, vector<32x256xf32>,
    return
  }
  func.func @transform_0(%arg0: i32) -> (i32, i32) {
    %c0_i32 = arith.constant 0 : i32
    %c0_i32_0 = arith.constant 0 : i32
    return %arg0, %c0_i32 : i32, i32
  }
  func.func @transform_1(%arg0: i32) -> (i32, i32) {
    %c0_i32 = arith.constant 0 : i32
    %c0_i32_0 = arith.constant 0 : i32
    %c0_i32_1 = arith.constant 0 : i32
    return %c0_i32, %c0_i32_0 : i32, i32
  }
  func.func @transform_2(%arg0: i32) -> (i32, i32) {
    %c0_i32 = arith.constant 0 : i32
    %c0_i32_0 = arith.constant 0 : i32
    %c0_i32_1 = arith.constant 0 : i32
    return %c0_i32, %c0_i32_0 : i32, i32
  }
  func.func @transform_3(%arg0: i32) -> (i32, i32) {
    %c0_i32 = arith.constant 0 : i32
    %c0_i32_0 = arith.constant 0 : i32
    return %arg0, %c0_i32 : i32, i32
  }
}

</mosaic_0001>

<bundles_post_ra>
// kernel: event_adaptor_attention.1
= control target key start
LH: loop header
LB: loop body
LE: loop exit
PB: predicated region body
PF: predicated region fallthrough
CT: control target
= control target key end

     0   :  { %s1799_s12 = smov 0   ;;  %s2907_s0 = inlined_call_operand.vmem [shape: f32[64,256], index: 0, kind: input, shape index: {}]   ;;  %s2908_s1 = inlined_call_operand.vmem [shape: f32[32,100], index: 1, kind: input, shape index: {}]   ;;  %s2909_s2 = inlined_call_operand.vmem [shape: f32[64,33], index: 2, kind: input, shape index: {}]   ;;  %s2910_s3 = inlined_call_operand.vmem [shape: f32[64,256], index: 3, kind: output, shape index: {}]  }
   0x1 LB: > { %s1549_s13 = sadd.s32 4294967295, %s1753_s12   ;;  %p1553_p0 = scmp.ge.s32.totalorder %s1753_s12, 1  ;;  %s1753_s12 = sphi %s1799_s12, %s13_s12  }
   0x2   : > { %p139_p1 = scmp.lt.s32.totalorder %s1753_s12, 3 }
   0x4   : > { %p140_p2 = pnand %p1553_p0, %p139_p1 }
   0x6   : > { %143 = sbr.rel (%p140_p2) target bundleno = 1664 (0x680), region = 32 }
   0xd   : > { %v1810_v0 = vld [vmem:[%s2908_s1] sm:$0xff]  ;;  %v1755_v1 = vmov 64   ;;  %v1756_v2 = vmov 68   ;;  %s1554_s16 = sshll.u32 %s1549_s13, 2  ;;  %v1817_v3 = vld [vmem:[%s2908_s1 + $0x8] sm:$0xff]  ;;  %v1826_v4 = vld [vmem:[%s2908_s1 + $0x18] sm:$0xff]  ;;  %v2911_v36 = vlaneseq }
   0xe   : > { %1637 = vset.pattern.permute.xlu1 %v1755_v1  ;;  %1636 = vset.pattern.permute.xlu0 %v1756_v2  ;;  %p166_p3 = scmp.lt.s32.totalorder %s1554_s16, 7  ;;  %v1757_v5 = vmov 65   ;;  %v1834_v6 = vld [vmem:[%s2908_s1 + $0x10] sm:$0xff]  ;;  %s1758_s27 = smov 17   ;;  %v1759_v9 = vmov 66   ;;  %v1761_v13 = vmov 67  }
   0xf   : > { %281 = vperm.xlu1 %1637, %v1810_v0   ;;  %215 = vperm.xlu0 %1636, %v1810_v0   ;;  %s1760_s28 = smov 16   ;;  %s1762_s29 = smov 15   ;;  %v1763_v14 = vmov 69   ;;  %v1765_v18 = vmov 70   ;;  %v1767_v19 = vmov 71   ;;  %v1769_v20 = vmov 72  }
  0x10   : > { %s2965_s16 = smov (!%p166_p3, %s1554_s16), 7  ;;  %s1764_s30 = smov 1   ;;  %v1771_v33 = vmov 73   ;;  %v2015_v39 = vand.u32 127, %v2911_v36 }
  0x11   : > { %s1578_s21 = sshll.u32 %s2965_s16, 4  ;;  %s1766_s4 = smov 127  }
  0x12   : > { %s1841_s26 = scalar_lea.vmem %s2907_s0, %s1578_s21  ;;  %s1768_s5 = smov 113   ;;  %v2022_v42 = vadd.s32 128, %v2015_v39  ;;  %v195_v43 = vand.u32 15, %v2015_v39  ;;  %vm197_vm0 = vcmp.ge.s32.totalorder %v2015_v39, 16  ;;  %vm257_vm2 = vcmp.lt.s32.totalorder %v2015_v39, 17 }
  0x13   : > { %285 = vperm.xlu1 %1637, %v1817_v3   ;;  %220 = vperm.xlu0 %1636, %v1817_v3   ;;  %v1846_v7 = vld [vmem:[%s1841_s26 + $0x10] sm:$0xff]  ;;  %v1851_v8 = vld [vmem:[%s1841_s26 + $0x18] sm:$0xff]  ;;  %v1860_v10 = vld [vmem:[%s1841_s26] sm:$0xff]  ;;  %s1770_s6 = smov 112   ;;  %s1772_s7 = smov 111   ;;  %vm328_vm3 = vcmp.lt.s32.totalorder %v2015_v39, 16 }
  0x14   : > { %v1866_v11 = vld [vmem:[%s1841_s26 + $0x8] sm:$0xff]  ;;  %v1898_v15 = vld [vmem:[%s1841_s26 + $0x20] sm:$0xff]  ;;  %v1905_v16 = vld [vmem:[%s1841_s26 + $0x30] sm:$0xff]  ;;  %v196_v46 = vand.u32 15, %v2022_v42  ;;  %vm2033_vm1 = vcmp.ge.s32.totalorder %v195_v43, 1  ;;  %vm2085_vm6 = vcmp.le.s32.totalorder %v195_v43, 14  ;;  %s177_s17 = scalar_lea.vmem %s2910_s3, %s1578_s21 }
  0x15   : > { %v1877_v12 = vld [vmem:[%s1841_s26 + $0x28] sm:$0xff]  ;;  %v1912_v17 = vld [vmem:[%s1841_s26 + $0x38] sm:$0xff]  ;;  %vm2057_vm5 = vmand %vm197_vm0, %vm2033_vm1  ;;  %vm397_vm8 = vcmp.lt.s32.totalorder %v2015_v39, 15  ;;  %vm468_vm10 = vcmp.lt.s32.totalorder %v2015_v39, 1  ;;  %vm537_vm11 = vcmp.lt.s32.totalorder %v2015_v39, 127  ;;  %vm200_vm12 = vcmp.lt.s32.totalorder %v2022_v42, 240 }
  0x16   : > { %vm2049_vm4 = vcmp.ge.s32.totalorder %v196_v46, 1  ;;  %vm2091_vm7 = vcmp.le.s32.totalorder %v196_v46, 14  ;;  %vm2104_vm9 = vmand %vm197_vm0, %vm2085_vm6  ;;  %vm2923_vm13 = vcmp.lt.s32.totalorder %v2015_v39, 113  ;;  %vm746_vm15 = vcmp.lt.s32.totalorder %v2015_v39, 111  ;;  %s1777_s13 = smov 45  }
  0x17   : > { %1638 = vset.pattern.permute.xlu1 %v1757_v5  ;;  %230 = vperm.xlu0 %1636, %v1826_v4   ;;  %vm2374_vm14 = vmand %vm200_vm12, %vm2049_vm4 }
  0x18   : > { %354 = vperm.xlu1 %1638, %v1817_v3  }
  0x1b   : > { %1640 = vset.pattern.permute.xlu0 %v1757_v5 }
  0x1c   : > { %1639 = vset.pattern.permute.xlu1 %v1756_v2  ;;  %350 = vperm.xlu0 %1640, %v1810_v0  }
  0x1d   : > { %225 = vperm.xlu1 %1639, %v1834_v6  }
  0x20   : > { %243 = vrot.lane.b32.xlu0 %v1846_v7, %s1758_s27 }
  0x21   : > { %1641 = vset.pattern.permute.xlu1 %v1755_v1 }
  0x22   : > { %289 = vperm.xlu1 %1641, %v1834_v6  }
  0x24   : > { %251 = vrot.lane.b32.xlu0 %v1851_v8, %s1758_s27 }
  0x26   : > { %293 = vperm.xlu1 %1641, %v1826_v4  }
  0x28   : > { %362 = vperm.xlu0 %1640, %v1826_v4  }
  0x2a   : > { %1642 = vset.pattern.permute.xlu1 %v1759_v9 }
  0x2b   : > { %425 = vperm.xlu1 %1642, %v1817_v3  }
  0x2c   : > { %1644 = vset.pattern.permute.xlu0 %v1759_v9 }
  0x2d   : > { %421 = vperm.xlu0 %1644, %v1810_v0  }
  0x2f   : > { %241 = vrot.lane.b32.xlu1 %v1860_v10, %s1758_s27 }
  0x30   : > { %1643 = vset.pattern.permute.xlu1 %v1757_v5 }
  0x31   : > { %312 = vrot.lane.b32.xlu0 %v1860_v10, %s1760_s28 }
  0x33   : > { %249 = vrot.lane.b32.xlu1 %v1866_v11, %s1758_s27 }
  0x35   : > { %320 = vrot.lane.b32.xlu0 %v1866_v11, %s1760_s28 }
  0x37   : > { %358 = vperm.xlu1 %1643, %v1834_v6  }
  0x39   : > { %429 = vperm.xlu0 %1644, %v1834_v6  }
  0x3b   : > { %1645 = vset.pattern.permute.xlu1 %v1761_v13 }
  0x3c   : > { %490 = vperm.xlu1 %1645, %v1810_v0  }
  0x3d   : > { %253 = vrot.lane.b32.xlu0 %v1877_v12, %s1758_s27 }
  0x3e   : > { %1648 = vset.pattern.permute.xlu0 %v1761_v13 }
  0x40   : > { %494 = vperm.xlu1 %1645, %v1817_v3  }
  0x41   : > { %381 = vrot.lane.b32.xlu0 %v1860_v10, %s1762_s29 }
  0x44   : > { %314 = vrot.lane.b32.xlu1 %v1846_v7, %s1760_s28 }
  0x45   : > { %389 = vrot.lane.b32.xlu0 %v1866_v11, %s1762_s29  ;;  %1646 = vset.pattern.permute.xlu1 %v1759_v9 }
  0x48   : > { %322 = vrot.lane.b32.xlu1 %v1851_v8, %s1760_s28 }
  0x49   : > { %498 = vperm.xlu0 %1648, %v1834_v6  }
  0x4c   : > { %433 = vperm.xlu1 %1646, %v1826_v4  }
  0x4d   : > { %1649 = vset.pattern.permute.xlu0 %v1763_v14 }
  0x4e   : > { %563 = vperm.xlu0 %1649, %v1817_v3  }
  0x50   : > { %1647 = vset.pattern.permute.xlu1 %v1763_v14 }
  0x51   : > { %559 = vperm.xlu1 %1647, %v1810_v0  }
  0x52   : > { %460 = vrot.lane.b32.xlu0 %v1866_v11, %s1764_s30 }
  0x55   : > { %245 = vrot.lane.b32.xlu1 %v1898_v15, %s1758_s27 }
  0x56   : > { %316 = vrot.lane.b32.xlu0 %v1898_v15, %s1760_s28  ;;  %1650 = vset.pattern.permute.xlu1 %v1761_v13 }
  0x59   : > { %247 = vrot.lane.b32.xlu1 %v1905_v16, %s1758_s27 }
  0x5a   : > { %324 = vrot.lane.b32.xlu0 %v1877_v12, %s1760_s28 }
  0x5d   : > { %255 = vrot.lane.b32.xlu1 %v1912_v17, %s1758_s27 }
  0x5e   : > { %567 = vperm.xlu0 %1649, %v1834_v6  }
  0x61   : > { %383 = vrot.lane.b32.xlu1 %v1846_v7, %s1762_s29 }
  0x62   : > { %1652 = vset.pattern.permute.xlu0 %v1765_v18 }
  0x63   : > { %634 = vperm.xlu0 %1652, %v1817_v3  }
  0x65   : > { %391 = vrot.lane.b32.xlu1 %v1851_v8, %s1762_s29 }
  0x67   : > { %393 = vrot.lane.b32.xlu0 %v1877_v12, %s1762_s29 }
  0x69   : > { %502 = vperm.xlu1 %1650, %v1826_v4  }
  0x6b   : > { %521 = vrot.lane.b32.xlu0 %v1860_v10, %s1766_s4 }
  0x6d   : > { %1651 = vset.pattern.permute.xlu1 %v1765_v18 }
  0x6e   : > { %630 = vperm.xlu1 %1651, %v1810_v0  }
  0x6f   : > { %529 = vrot.lane.b32.xlu0 %v1866_v11, %s1766_s4 }
  0x72   : > { %452 = vrot.lane.b32.xlu1 %v1860_v10, %s1764_s30 }
  0x73   : > { %638 = vperm.xlu0 %1652, %v1834_v6   ;;  %1653 = vset.pattern.permute.xlu1 %v1763_v14 }
  0x76   : > { %454 = vrot.lane.b32.xlu1 %v1846_v7, %s1764_s30 }
  0x77   : > { %1655 = vset.pattern.permute.xlu0 %v1767_v19 }
  0x78   : > { %703 = vperm.xlu0 %1655, %v1817_v3  }
  0x7a   : > { %462 = vrot.lane.b32.xlu1 %v1851_v8, %s1764_s30 }
  0x7c   : > { %464 = vrot.lane.b32.xlu0 %v1877_v12, %s1764_s30 }
  0x7e   : > { %318 = vrot.lane.b32.xlu1 %v1905_v16, %s1760_s28 }
  0x80   : > { %590 = vrot.lane.b32.xlu0 %v1860_v10, %s1768_s5 }
  0x82   : > { %326 = vrot.lane.b32.xlu1 %v1912_v17, %s1760_s28 }
  0x84   : > { %598 = vrot.lane.b32.xlu0 %v1866_v11, %s1768_s5 }
  0x86   : > { %571 = vperm.xlu1 %1653, %v1826_v4  }
  0x88   : > { %707 = vperm.xlu0 %1655, %v1834_v6  }
  0x8a   : > { %1654 = vset.pattern.permute.xlu1 %v1767_v19 }
  0x8b   : > { %699 = vperm.xlu1 %1654, %v1810_v0  }
  0x8c   : > { %1658 = vset.pattern.permute.xlu0 %v1769_v20 }
  0x8d   : > { %774 = vperm.xlu0 %1658, %v1817_v3  }
  0x8e   : > { %v1953_v21 = vpop.permute.xlu1 %281  ;;  %v1955_v22 = vpop.permute.xlu0 %215 }
  0x8f   : > { %385 = vrot.lane.b32.xlu1 %v1898_v15, %s1762_s29  ;;  %v233_v58 = vmul.f32 %v1955_v22, %v1860_v10  ;;  %v234_v59 = vmul.f32 %v1955_v22, %v1866_v11 }
  0x90   : > { %1656 = vset.pattern.permute.xlu1 %v1765_v18 }
  0x91   : > { %527 = vrot.lane.b32.xlu0 %v1905_v16, %s1766_s4 }
  0x92   : > { %v1961_v23 = vpop.permute.xlu1 %285  ;;  %v1963_v24 = vpop.permute.xlu0 %220 }
  0x93   : > { %387 = vrot.lane.b32.xlu1 %v1905_v16, %s1762_s29  ;;  %v235_v52 = vmul.f32 %v1963_v24, %v1846_v7 }
  0x95   : > { %535 = vrot.lane.b32.xlu0 %v1912_v17, %s1766_s4 }
  0x96   : > { %v1969_v25 = vpop.permute.xlu0 %230 }
  0x97   : > { %v1971_v26 = vpop.permute.xlu1 %354  ;;  %395 = vrot.lane.b32.xlu1 %v1912_v17, %s1762_s29 }
  0x99   : > { %663 = vrot.lane.b32.xlu0 %v1846_v7, %s1770_s6 }
  0x9b   : > { %v1977_v27 = vpop.permute.xlu0 %350  ;;  %523 = vrot.lane.b32.xlu1 %v1846_v7, %s1766_s4 }
  0x9c   : > { %v1981_v28 = vpop.permute.xlu1 %225 }
  0x9d   : > { %671 = vrot.lane.b32.xlu0 %v1851_v8, %s1770_s6 }
  0x9f   : > { %v1985_v29 = vpop.permute.xlu0 %243  ;;  %531 = vrot.lane.b32.xlu1 %v1851_v8, %s1766_s4 }
  0xa1   : > { %v1989_v30 = vpop.permute.xlu1 %289  ;;  %782 = vperm.xlu0 %1658, %v1826_v4  }
  0xa3   : > { %v1992_v31 = vpop.permute.xlu0 %251  ;;  %642 = vperm.xlu1 %1656, %v1826_v4  }
  0xa5   : > { %v1995_v32 = vpop.permute.xlu1 %293  ;;  %594 = vrot.lane.b32.xlu0 %v1898_v15, %s1768_s5 }
  0xa6   : > { %1662 = vset.pattern.permute.xlu0 %v1771_v33 }
  0xa7   : > { %1657 = vset.pattern.permute.xlu1 %v1769_v20  ;;  %v2001_v34 = vpop.permute.xlu0 %362 }
  0xa8   : > { %770 = vperm.xlu1 %1657, %v1810_v0  }
  0xa9   : > { %602 = vrot.lane.b32.xlu0 %v1877_v12, %s1768_s5 }
  0xaa   : > { %v2006_v35 = vpop.permute.xlu1 %425 }
  0xac   : > { %v2008_v37 = vpop.permute.xlu0 %421  ;;  %456 = vrot.lane.b32.xlu1 %v1898_v15, %s1764_s30 }
  0xad   : > { %730 = vrot.lane.b32.xlu0 %v1860_v10, %s1772_s7  ;;  %1659 = vset.pattern.permute.xlu1 %v1767_v19 }
  0xae   : > { %v242_v38 = vpop.permute.xlu1 %241 }
  0xb0   : > { %v313_v40 = vpop.permute.xlu0 %312  ;;  %458 = vrot.lane.b32.xlu1 %v1905_v16, %s1764_s30 }
  0xb1   : > { %738 = vrot.lane.b32.xlu0 %v1866_v11, %s1772_s7 }
  0xb2   : > { %v250_v41 = vpop.permute.xlu1 %249 }
  0xb3   : > { %v258_v49 = vsel %vm257_vm2, %v242_v38, %v250_v41  ;;  %v262_v50 = vsel %vm257_vm2, %v250_v41, %v242_v38 }
  0xb4   : > { %v321_v44 = vpop.permute.xlu0 %320  ;;  %466 = vrot.lane.b32.xlu1 %v1912_v17, %s1764_s30  ;;  %v272_v54 = vsel %vm2057_vm5, %v262_v50, 0.0  ;;  %v273_v55 = vsel %vm2049_vm4, %v258_v49, 0.0 }
  0xb5   : > { %665 = vrot.lane.b32.xlu0 %v1898_v15, %s1770_s6  ;;  %v333_v57 = vsel %vm328_vm3, %v321_v44, %v313_v40  ;;  %v296_v60 = vmul.f32 %v1953_v21, %v272_v54  ;;  %v297_v61 = vmul.f32 %v1953_v21, %v273_v55  ;;  %v329_v63 = vsel %vm328_vm3, %v313_v40, %v321_v44 }
  0xb6   : > { %v2029_v45 = vpop.permute.xlu1 %358  ;;  %v341_v1 = vsel %vm197_vm0, %v333_v57, 0.0  ;;  %v366_v19 = vmul.f32 %v1977_v27, %v329_v63 }
  0xb7   : > { %v304_v13 = vadd.f32 %v296_v60, %v233_v58  ;;  %v305_v14 = vadd.f32 %v297_v61, %v234_v59  ;;  %v365_v18 = vmul.f32 %v1977_v27, %v341_v1 }
  0xb8   : > { %v2038_v48 = vpop.permute.xlu0 %429  ;;  %592 = vrot.lane.b32.xlu1 %v1846_v7, %s1768_s5 }
  0xb9   : > { %673 = vrot.lane.b32.xlu0 %v1877_v12, %s1770_s6  ;;  %v373_v44 = vadd.f32 %v365_v18, %v304_v13  ;;  %v374_v46 = vadd.f32 %v366_v19, %v305_v14  ;;  %v238_v18 = vmul.f32 %v1981_v28, %v1877_v12 }
  0xbb   : > { %v2061_v53 = vpop.permute.xlu1 %490 }
  0xbc   : > { %v254_v56 = vpop.permute.xlu0 %253  ;;  %600 = vrot.lane.b32.xlu1 %v1851_v8, %s1768_s5 }
  0xbd   : > { %810 = vperm.xlu0 %1662, %v1834_v6  }
  0xbf   : > { %v2078_v62 = vpop.permute.xlu1 %494 }
  0xc0   : > { %2930 = vst [vmem:[#allocation2_spill] sm:$0xff] %v2078_v62  ;;  %v382_v2 = vpop.permute.xlu0 %381  ;;  %711 = vperm.xlu1 %1659, %v1826_v4  }
  0xc1   : > { %736 = vrot.lane.b32.xlu0 %v1905_v16, %s1772_s7 }
  0xc3   : > { %v2098_v21 = vpop.permute.xlu1 %314 }
  0xc4   : > { %v390_v38 = vpop.permute.xlu0 %389  ;;  %525 = vrot.lane.b32.xlu1 %v1898_v15, %s1766_s4 }
  0xc5   : > { %v398_v40 = vsel %vm397_vm8, %v382_v2, %v390_v38  ;;  %v402_v27 = vsel %vm397_vm8, %v390_v38, %v382_v2  ;;  %1660 = vset.pattern.permute.xlu1 %v1769_v20  ;;  %744 = vrot.lane.b32.xlu0 %v1912_v17, %s1772_s7 }
  0xc6   : > { %v412_v41 = vsel %vm2104_vm9, %v402_v27, 0.0  ;;  %v413_v43 = vsel %vm2091_vm7, %v398_v40, 0.0 }
  0xc7   : > { %v436_v49 = vmul.f32 %v2008_v37, %v412_v41  ;;  %v437_v50 = vmul.f32 %v2008_v37, %v413_v43  ;;  %v2123_v54 = vpop.permute.xlu1 %322 }
  0xc8   : > { %533 = vrot.lane.b32.xlu1 %v1877_v12, %s1766_s4  ;;  %v2127_v20 = vpop.permute.xlu0 %498 }
  0xc9   : > { %v444_v55 = vadd.f32 %v436_v49, %v373_v44  ;;  %v445_v57 = vadd.f32 %v437_v50, %v374_v46 }
  0xcb   : > { %v2129_v58 = vpop.permute.xlu1 %433 }
  0xcc   : > { %661 = vrot.lane.b32.xlu1 %v1860_v10, %s1770_s6 }
  0xcd   : > { %v2133_v59 = vpop.permute.xlu0 %563 }
  0xce   : > { %2937 = vst [vmem:[#allocation3_spill] sm:$0xff] %v2133_v59 }
  0xd0   : > { %669 = vrot.lane.b32.xlu1 %v1866_v11, %s1770_s6  ;;  %v2137_v37 = vpop.permute.xlu1 %559 }
  0xd1   : > { %v461_v60 = vpop.permute.xlu0 %460 }
  0xd4   : > { %778 = vperm.xlu1 %1660, %v1834_v6   ;;  %v246_v61 = vpop.permute.xlu1 %245 }
  0xd5   : > { %v260_v63 = vsel %vm257_vm2, %v246_v61, %v254_v56  ;;  %v264_v1 = vsel %vm257_vm2, %v254_v56, %v246_v61  ;;  %v317_v2 = vpop.permute.xlu0 %316  ;;  %v237_v56 = vmul.f32 %v1981_v28, %v1898_v15 }
  0xd6   : > { %v276_v10 = vsel %vm2057_vm5, %v264_v1, 0.0  ;;  %v277_v13 = vsel %vm2049_vm4, %v260_v63, 0.0 }
  0xd7   : > { %v301_v11 = vmul.f32 %v1989_v30, %v277_v13  ;;  %v300_v14 = vmul.f32 %v1989_v30, %v276_v10 }
  0xd8   : > { %1661 = vset.pattern.permute.xlu1 %v1771_v33  ;;  %v248_v6 = vpop.permute.xlu1 %247 }
  0xd9   : > { %v325_v19 = vpop.permute.xlu0 %324  ;;  %802 = vperm.xlu1 %1661, %v1810_v0   ;;  %v309_v27 = vadd.f32 %v301_v11, %v238_v18  ;;  %v308_v41 = vadd.f32 %v300_v14, %v237_v56 }
  0xda   : > { %v331_v38 = vsel %vm328_vm3, %v317_v2, %v325_v19  ;;  %v335_v40 = vsel %vm328_vm3, %v325_v19, %v317_v2 }
  0xdb   : > { %v345_v30 = vsel %vm197_vm0, %v335_v40, 0.0  ;;  %v370_v33 = vmul.f32 %v2029_v45, %v331_v38 }
  0xdc   : > { %v369_v43 = vmul.f32 %v2029_v45, %v345_v30  ;;  %v256_v44 = vpop.permute.xlu1 %255 }
  0xdd   : > { %v378_v0 = vadd.f32 %v370_v33, %v309_v27  ;;  %806 = vperm.xlu1 %1661, %v1817_v3   ;;  %v2165_v28 = vpop.permute.xlu0 %567 }
  0xde   : > { %v377_v46 = vadd.f32 %v369_v43, %v308_v41 }
  0xe0   : > { %v2167_v49 = vpop.permute.xlu1 %383 }
  0xe1   : > { %596 = vrot.lane.b32.xlu1 %v1905_v16, %s1768_s5 }
  0xe2   : > { %v2171_v50 = vpop.permute.xlu0 %634 }
  0xe3   : > { %2938 = vst [vmem:[#allocation4_spill] sm:$0xff] %v2171_v50 }
  0xe4   : > { %v2173_v61 = vpop.permute.xlu1 %391 }
  0xe5   : > { %604 = vrot.lane.b32.xlu1 %v1912_v17, %s1768_s5 }
  0xe6   : > { %v394_v45 = vpop.permute.xlu0 %393 }
  0xe8   : > { %v2177_v63 = vpop.permute.xlu1 %502 }
  0xe9   : > { %732 = vrot.lane.b32.xlu1 %v1846_v7, %s1772_s7 }
  0xea   : > { %v2181_v3 = vpop.permute.xlu0 %521 }
  0xed   : > { %740 = vrot.lane.b32.xlu1 %v1851_v8, %s1772_s7  ;;  %v2185_v1 = vpop.permute.xlu1 %630 }
  0xee   : > { %v2187_v2 = vpop.permute.xlu0 %529 }
  0xf1   : > { %667 = vrot.lane.b32.xlu1 %v1905_v16, %s1770_s6  ;;  %v453_v10 = vpop.permute.xlu1 %452 }
  0xf2   : > { %v469_v13 = vsel %vm468_vm10, %v453_v10, %v461_v60  ;;  %v473_v11 = vsel %vm468_vm10, %v461_v60, %v453_v10  ;;  %v2196_v14 = vpop.permute.xlu0 %638 }
  0xf3   : > { %v481_v18 = vsel %vm2033_vm1, %v473_v11, 0.0  ;;  %v482_v19 = vsel %vm2049_vm4, %v469_v13, 0.0  ;;  %v265_v11 = vsel %vm257_vm2, %v256_v44, %v248_v6 }
  0xf4   : > { %v505_v56 = vmul.f32 %v2061_v53, %v481_v18  ;;  %v506_v38 = vmul.f32 %v2061_v53, %v482_v19 }
  0xf5   : > { %675 = vrot.lane.b32.xlu1 %v1912_v17, %s1770_s6  ;;  %v2206_v40 = vpop.permute.xlu1 %454 }
  0xf6   : > { %v2208_v27 = vadd.f32 %v505_v56, %v444_v55  ;;  %v2210_v60 = vadd.f32 %v506_v38, %v445_v57  ;;  %v278_v38 = vsel %vm2057_vm5, %v265_v11, 0.0 }
  0xf7   : > { %v2212_v30 = vpop.permute.xlu0 %703 }
  0xf8   : > { %2939 = vst [vmem:[#allocation5_spill] sm:$0xff] %v2212_v30 }
  0xf9   : > { %814 = vperm.xlu1 %1661, %v1826_v4   ;;  %v2215_v33 = vpop.permute.xlu1 %462  ;;  %v261_v4 = vsel %vm257_vm2, %v248_v6, %v256_v44 }
  0xfa   : > { %v279_v36 = vsel %vm2049_vm4, %v261_v4, 0.0 }
  0xfb   : > { %v2217_v41 = vpop.permute.xlu0 %464  ;;  %v303_v4 = vmul.f32 %v1995_v32, %v279_v36 }
  0xfd   : > { %v319_v43 = vpop.permute.xlu1 %318  ;;  %734 = vrot.lane.b32.xlu1 %v1898_v15, %s1772_s7 }
  0xff   : > { %v2223_v55 = vpop.permute.xlu0 %590 }
 0x101   : > { %v327_v53 = vpop.permute.xlu1 %326  ;;  %742 = vrot.lane.b32.xlu1 %v1877_v12, %s1772_s7 }
 0x102   : > { %v336_v12 = vsel %vm328_vm3, %v327_v53, %v319_v43  ;;  %v332_v50 = vsel %vm328_vm3, %v319_v43, %v327_v53 }
 0x103   : > { %v2227_v10 = vpop.permute.xlu0 %598  ;;  %v372_v53 = vmul.f32 %v2001_v34, %v332_v50 }
 0x105   : > { %v2225_v57 = vpop.permute.xlu1 %571 }
 0x107   : > { %v2235_v18 = vpop.permute.xlu0 %707 }
 0x108   : > { %2940 = vst [vmem:[#allocation6_spill] sm:$0xff] %v2235_v18 }
 0x10a   : > { %v2229_v13 = vpop.permute.xlu1 %699 }
 0x10c   : > { %v2259_v62 = vpop.permute.xlu0 %774 }
 0x10e   : > { %v386_v15 = vpop.permute.xlu1 %385 }
 0x10f   : > { %v400_v19 = vsel %vm397_vm8, %v386_v15, %v394_v45  ;;  %v404_v56 = vsel %vm397_vm8, %v394_v45, %v386_v15  ;;  %v347_v45 = vsel %vm197_vm0, %v336_v12, 0.0  ;;  %v302_v15 = vmul.f32 %v1995_v32, %v278_v38 }
 0x110   : > { %v416_v6 = vsel %vm2104_vm9, %v404_v56, 0.0  ;;  %v417_v44 = vsel %vm2091_vm7, %v400_v19, 0.0  ;;  %v239_v19 = vmul.f32 %v1969_v25, %v1905_v16  ;;  %v371_v43 = vmul.f32 %v2001_v34, %v347_v45  ;;  %v528_v50 = vpop.permute.xlu0 %527 }
 0x111   : > { %v440_v18 = vmul.f32 %v2038_v48, %v416_v6  ;;  %v441_v30 = vmul.f32 %v2038_v48, %v417_v44  ;;  %v240_v48 = vmul.f32 %v1969_v25, %v1912_v17 }
 0x112   : > { %v388_v11 = vpop.permute.xlu1 %387  ;;  %v310_v6 = vadd.f32 %v302_v15, %v239_v19 }
 0x113   : > { %v448_v59 = vadd.f32 %v440_v18, %v377_v46  ;;  %v449_v56 = vadd.f32 %v441_v30, %v378_v0  ;;  %v311_v44 = vadd.f32 %v303_v4, %v240_v48 }
 0x114   : > { %v379_v17 = vadd.f32 %v371_v43, %v310_v6  ;;  %v536_v4 = vpop.permute.xlu0 %535 }
 0x115   : > { %v380_v25 = vadd.f32 %v372_v53, %v311_v44 }
 0x116   : > { %v396_v12 = vpop.permute.xlu1 %395 }
 0x117   : > { %v401_v32 = vsel %vm397_vm8, %v388_v11, %v396_v12  ;;  %v405_v36 = vsel %vm397_vm8, %v396_v12, %v388_v11 }
 0x118   : > { %v418_v0 = vsel %vm2104_vm9, %v405_v36, 0.0  ;;  %v419_v16 = vsel %vm2091_vm7, %v401_v32, 0.0  ;;  %v2288_v48 = vpop.permute.xlu0 %663 }
 0x119   : > { %v442_v46 = vmul.f32 %v2129_v58, %v418_v0  ;;  %v443_v34 = vmul.f32 %v2129_v58, %v419_v16  ;;  %v2917_v58 = vmov 0.0  }
 0x11a   : > { %v524_v30 = vpop.permute.xlu1 %523  ;;  %1018 = vmatprep.mubr.f32.mxu0 %v2917_v58  ;;  %1300 = vmatprep.mubr.f32.mxu1 %v2917_v58 }
 0x11b   : > { %v450_v18 = vadd.f32 %v442_v46, %v379_v17  ;;  %v451_v38 = vadd.f32 %v443_v34, %v380_v25  ;;  %v541_v34 = vsel %vm537_vm11, %v528_v50, %v536_v4 }
 0x11c   : > { %v2294_v12 = vpop.permute.xlu0 %671 }
 0x11e   : > { %v532_v45 = vpop.permute.xlu1 %531 }
 0x11f   : > { %v2280_v11 = vsel %vm537_vm11, %v524_v30, %v532_v45  ;;  %v2284_v15 = vsel %vm537_vm11, %v532_v45, %v524_v30 }
 0x120   : > { %v2316_v30 = vpop.permute.xlu0 %782  ;;  %v552_v51 = vsel %vm2085_vm6, %v2280_v11, 0.0  ;;  %v2952_v11 = vld [vmem:[#allocation3_spill] sm:$0xff] }
 0x121   : > { %2941 = vst [vmem:[#allocation7_spill] sm:$0xff] %v2316_v30 }
 0x122   : > { %v2286_v19 = vpop.permute.xlu1 %642 }
 0x127   : > { %v2292_v43 = vpop.permute.xlu1 %770 }
 0x12b   : > { %v457_v53 = vpop.permute.xlu1 %456 }
 0x12c   : > { %v471_v6 = vsel %vm468_vm10, %v457_v53, %v2217_v41  ;;  %v475_v44 = vsel %vm468_vm10, %v2217_v41, %v457_v53  ;;  %v545_v41 = vsel %vm537_vm11, %v536_v4, %v528_v50 }
 0x12d   : > { %v485_v32 = vsel %vm2033_vm1, %v475_v44, 0.0  ;;  %v486_v36 = vsel %vm2049_vm4, %v471_v6, 0.0 }
 0x12e   : > { %v509_v0 = vmul.f32 %v2127_v20, %v485_v32  ;;  %v510_v16 = vmul.f32 %v2127_v20, %v486_v36 }
 0x12f   : > { %v459_v17 = vpop.permute.xlu1 %458 }
 0x130   : > { %v2308_v25 = vadd.f32 %v509_v0, %v448_v59  ;;  %v2310_v46 = vadd.f32 %v510_v16, %v449_v56  ;;  %v556_v59 = vsel %vm2085_vm6, %v541_v34, 0.0  ;;  %v557_v56 = vsel %vm2091_vm7, %v545_v41, 0.0  ;;  %v595_v16 = vpop.permute.xlu0 %594 }
 0x131   : > { %v580_v36 = vmul.f32 %v2225_v57, %v556_v59  ;;  %v581_v0 = vmul.f32 %v2225_v57, %v557_v56  ;;  %v538_v57 = vsel %vm537_vm11, %v2181_v3, %v2187_v2  ;;  %v2362_v59 = vld [vmem:[%s2909_s2 + $0x8] sm:$0xff]  ;;  %v1774_v56 = vmov 32  }
 0x132   : > { %2944 = vst [vmem:[#allocation10_spill] sm:$0xff] %v2362_v59  ;;  %1663 = vset.pattern.permute.xlu1 %v1774_v56  ;;  %1664 = vset.pattern.permute.xlu0 %v1774_v56 }
 0x133   : > { %v467_v45 = vpop.permute.xlu1 %466  ;;  %904 = vperm.xlu0 %1664, %v2362_v59  }
 0x134   : > { %v472_v53 = vsel %vm468_vm10, %v459_v17, %v467_v45  ;;  %v476_v20 = vsel %vm468_vm10, %v467_v45, %v459_v17 }
 0x135   : > { %v487_v6 = vsel %vm2033_vm1, %v476_v20, 0.0  ;;  %v488_v50 = vsel %vm2049_vm4, %v472_v53, 0.0  ;;  %v603_v53 = vpop.permute.xlu0 %602 }
 0x136   : > { %v511_v4 = vmul.f32 %v2177_v63, %v487_v6  ;;  %v512_v44 = vmul.f32 %v2177_v63, %v488_v50  ;;  %v609_v50 = vsel %vm2923_vm13, %v595_v16, %v603_v53 }
 0x137   : > { %v2332_v32 = vpop.permute.xlu1 %592 }
 0x138   : > { %v519_v17 = vadd.f32 %v511_v4, %v450_v18  ;;  %v520_v34 = vadd.f32 %v512_v44, %v451_v38  ;;  %v542_v18 = vsel %vm537_vm11, %v2187_v2, %v2181_v3  ;;  %v2357_v38 = vld [vmem:[%s2909_s2] sm:$0xff]  ;;  %v613_v4 = vsel %vm2923_vm13, %v603_v53, %v595_v16 }
 0x139   : > { %v731_v63 = vpop.permute.xlu0 %730  ;;  %2943 = vst [vmem:[#allocation9_spill] sm:$0xff] %v2357_v38  ;;  %899 = vperm.xlu1 %1663, %v2357_v38   ;;  %v607_v2 = vsel %vm2923_vm13, %v2223_v55, %v2227_v10  ;;  %v611_v44 = vsel %vm2923_vm13, %v2227_v10, %v2223_v55  ;;  %v551_v16 = vsel %vm2091_vm7, %v542_v18, 0.0  ;;  %v625_v53 = vsel %vm2033_vm1, %v609_v50, 0.0  ;;  %v2406_v18 = vld [vmem:[%s2909_s2 + $0x10] sm:$0xff] }
 0x13a   : > { %v2336_v41 = vadd.f32 %v580_v36, %v519_v17  ;;  %v2338_v45 = vadd.f32 %v581_v0, %v520_v34  ;;  %v550_v0 = vsel %vm2085_vm6, %v538_v57, 0.0  ;;  %v626_v55 = vsel %vm2374_vm14, %v613_v4, 0.0 }
 0x13b   : > { %v2340_v20 = vpop.permute.xlu1 %600  ;;  %v621_v56 = vsel %vm2033_vm1, %v607_v2, 0.0  ;;  %v622_v50 = vsel %vm2374_vm14, %v611_v44, 0.0  ;;  %v649_v38 = vmul.f32 %v2196_v14, %v625_v53  ;;  %v650_v30 = vmul.f32 %v2196_v14, %v626_v55  ;;  %v2439_v14 = vld [vmem:[%s2909_s2 + $0x30] sm:$0xff] }
 0x13c   : > { %vm677_vm13 = vcmp.lt.s32.totalorder %v2015_v39, 112 }
 0x13d   : > { %v739_v4 = vpop.permute.xlu0 %738  ;;  %909 = vperm.xlu1 %1663, %v2406_v18   ;;  %v679_v47 = vsel %vm677_vm13, %v2288_v48, %v2294_v12 }
 0x13f   : > { %v2342_v58 = vpop.permute.xlu1 %711 }
 0x140   : > { %2942 = vst [vmem:[#allocation8_spill] sm:$0xff] %v2342_v58  ;;  %v575_v58 = vmul.f32 %v2137_v37, %v551_v16 }
 0x142   : > { %v583_v55 = vadd.f32 %v575_v58, %v2210_v60  ;;  %v2474_v60 = vld [vmem:[%s2909_s2 + $0x28] sm:$0xff] }
 0x143   : > { %v526_v6 = vpop.permute.xlu1 %525 }
 0x147   : > { %v534_v36 = vpop.permute.xlu1 %533 }
 0x148   : > { %v540_v17 = vsel %vm537_vm11, %v526_v6, %v534_v36  ;;  %v544_v34 = vsel %vm537_vm11, %v534_v36, %v526_v6  ;;  %v2411_v6 = vld [vmem:[%s2909_s2 + $0x20] sm:$0xff]  ;;  %vm2445_vm11 = vmand %vm200_vm12, %vm2091_vm7 }
 0x149   : > { %v554_v10 = vsel %vm2085_vm6, %v540_v17, 0.0  ;;  %v555_v57 = vsel %vm2091_vm7, %v544_v34, 0.0  ;;  %919 = vperm.xlu0 %1664, %v2411_v6   ;;  %v574_v34 = vmul.f32 %v2137_v37, %v550_v0  ;;  %v2434_v0 = vld [vmem:[%s2909_s2 + $0x18] sm:$0xff] }
 0x14a   : > { %v578_v36 = vmul.f32 %v2165_v28, %v554_v10  ;;  %v579_v17 = vmul.f32 %v2165_v28, %v555_v57  ;;  %v645_v10 = vmul.f32 %v2185_v1, %v621_v56  ;;  %v646_v28 = vmul.f32 %v2185_v1, %v622_v50  ;;  %914 = vperm.xlu1 %1663, %v2434_v0  }
 0x14b   : > { %v662_v59 = vpop.permute.xlu1 %661  ;;  %v747_v57 = vsel %vm746_vm15, %v731_v63, %v739_v4  ;;  %v751_v1 = vsel %vm746_vm15, %v739_v4, %v731_v63  ;;  %v582_v16 = vadd.f32 %v574_v34, %v2208_v27 }
 0x14c   : > { %v586_v2 = vadd.f32 %v578_v36, %v2308_v25  ;;  %v587_v44 = vadd.f32 %v579_v17, %v2310_v46  ;;  %v761_v56 = vsel %vm2085_vm6, %v747_v57, 0.0  ;;  %v762_v50 = vsel %vm2445_vm11, %v751_v1, 0.0  ;;  %v2493_v57 = vld [vmem:[%s2909_s2 + $0x38] sm:$0xff] }
 0x14d   : > { %929 = vperm.xlu0 %1664, %v2439_v14   ;;  %v654_v58 = vadd.f32 %v646_v28, %v583_v55  ;;  %v334_v1 = vsel %vm328_vm3, %v2123_v54, %v2098_v21 }
 0x14e   : > { %v2451_v25 = vadd.f32 %v649_v38, %v586_v2  ;;  %v2453_v46 = vadd.f32 %v650_v30, %v587_v44  ;;  %v653_v38 = vadd.f32 %v645_v10, %v582_v16  ;;  %924 = vperm.xlu1 %1663, %v2474_v60   ;;  %v263_v2 = vsel %vm257_vm2, %v1992_v31, %v1985_v29 }
 0x14f   : > { %v670_v53 = vpop.permute.xlu1 %669  ;;  %v786_v44 = vmul.f32 %v2292_v43, %v762_v50  ;;  %v343_v55 = vsel %vm197_vm0, %v334_v1, 0.0  ;;  %v474_v50 = vsel %vm468_vm10, %v2215_v33, %v2206_v40  ;;  %vm2950_vm0 = vcmp.lt.s32.totalorder %v2015_v39, 113 }
 0x150   : > { %v678_v63 = vsel %vm677_vm13, %v662_v59, %v670_v53  ;;  %v682_v30 = vsel %vm677_vm13, %v670_v53, %v662_v59  ;;  %v785_v59 = vmul.f32 %v2292_v43, %v761_v56  ;;  %v274_v43 = vsel %vm2057_vm5, %v263_v2, 0.0 }
 0x151   : > { %v691_v27 = vsel %vm200_vm12, %v682_v30, 0.0  ;;  %v714_v4 = vmul.f32 %v2229_v13, %v678_v63  ;;  %v399_v56 = vsel %vm397_vm8, %v2167_v49, %v2173_v61  ;;  %v2514_v63 = vpop.permute.xlu0 %665  ;;  %v298_v30 = vmul.f32 %v1961_v23, %v274_v43 }
 0x152   : > { %v715_v36 = vmul.f32 %v2229_v13, %v691_v27  ;;  %v259_v13 = vsel %vm257_vm2, %v1985_v29, %v1992_v31  ;;  %934 = vperm.xlu1 %1663, %v2493_v57   ;;  %v403_v31 = vsel %vm397_vm8, %v2173_v61, %v2167_v49  ;;  %v236_v49 = vmul.f32 %v1963_v24, %v1851_v8  ;;  %vm2951_vm2 = vmmov %vm2950_vm0 }
 0x153   : > { %v722_v17 = vadd.f32 %v714_v4, %v653_v38  ;;  %v2479_v34 = vpop.permute.xlu1 %778  ;;  %v275_v29 = vsel %vm2049_vm4, %v259_v13, 0.0  ;;  %v330_v38 = vsel %vm328_vm3, %v2098_v21, %v2123_v54  ;;  %v414_v7 = vsel %vm2104_vm9, %v403_v31, 0.0  ;;  %vm2953_vm3 = vmmov %vm2950_vm0 }
 0x154   : > { %v723_v10 = vadd.f32 %v715_v36, %v654_v58  ;;  %v299_v61 = vmul.f32 %v1961_v23, %v275_v29  ;;  %v470_v27 = vsel %vm468_vm10, %v2206_v40, %v2215_v33  ;;  %v367_v21 = vmul.f32 %v1971_v26, %v343_v55 }
 0x155   : > { %v793_v28 = vadd.f32 %v785_v59, %v722_v17  ;;  %v415_v54 = vsel %vm2091_vm7, %v399_v56, 0.0  ;;  %v368_v58 = vmul.f32 %v1971_v26, %v330_v38  ;;  %v483_v8 = vsel %vm2033_vm1, %v474_v50, 0.0  ;;  %v2548_v33 = vpop.permute.xlu0 %673  ;;  %v2949_v17 = vld [vmem:[#allocation2_spill] sm:$0xff] }
 0x156   : > { %v794_v16 = vadd.f32 %v786_v44, %v723_v10  ;;  %v306_v23 = vadd.f32 %v298_v30, %v235_v52  ;;  %v438_v24 = vmul.f32 %v2006_v35, %v414_v7  ;;  %v484_v22 = vsel %vm2049_vm4, %v470_v27, 0.0  ;;  %vm2954_vm4 = vmmov %vm2950_vm0 }
 0x157   : > { %v307_v36 = vadd.f32 %v299_v61, %v236_v49  ;;  %v439_v40 = vmul.f32 %v2006_v35, %v415_v54  ;;  %v507_v2 = vmul.f32 %v2949_v17, %v483_v8  ;;  %v608_v26 = vsel %vm2950_vm0, %v2332_v32, %v2340_v20  ;;  %v2955_v61 = vld [vmem:[#allocation4_spill] sm:$0xff] }
 0x158   : > { %v803_v53 = vpop.permute.xlu1 %802  ;;  %v375_v59 = vadd.f32 %v367_v21, %v306_v23  ;;  %v508_v13 = vmul.f32 %v2949_v17, %v484_v22  ;;  %v612_v35 = vsel %vm2951_vm2, %v2340_v20, %v2332_v32  ;;  %v553_v43 = vsel %vm2091_vm7, %v2284_v15, 0.0 }
 0x159   : > { %v376_v10 = vadd.f32 %v368_v58, %v307_v36  ;;  %v623_v31 = vsel %vm2033_vm1, %v608_v26, 0.0  ;;  %v2568_v55 = vpop.permute.xlu0 %810  ;;  %v2570_v56 = vadd.f32 %v803_v53, %v794_v16  ;;  %v576_v30 = vmul.f32 %v2952_v11, %v552_v51  ;;  %v2956_v26 = vld [vmem:[#allocation5_spill] sm:$0xff] }
 0x15a   : > { %v446_v1 = vadd.f32 %v438_v24, %v375_v59  ;;  %v624_v38 = vsel %vm2374_vm14, %v612_v35, 0.0  ;;  %v2575_v32 = vadd.f32 %v803_v53, %v793_v28  ;;  %v577_v9 = vmul.f32 %v2952_v11, %v553_v43 }
 0x15b   : > { %v447_v29 = vadd.f32 %v439_v40, %v376_v10  ;;  %v683_v16 = vsel %vm677_vm13, %v2294_v12, %v2288_v48  ;;  %v647_v7 = vmul.f32 %v2955_v61, %v623_v31  ;;  %v648_v27 = vmul.f32 %v2955_v61, %v624_v38 }
 0x15c   : > { %v2539_v4 = vpop.permute.xlu1 %806  ;;  %v515_v52 = vadd.f32 %v507_v2, %v446_v1  ;;  %v834_v58 = vmul.f32 0.044715, %v2570_v56  ;;  %v833_v23 = vmul.f32 0.044715, %v2575_v32  ;;  %vm1227_vm5 = vcmask 523264  }
 0x15d   : > { %v516_v50 = vadd.f32 %v508_v13, %v447_v29  ;;  %v737_v3 = vpop.permute.xlu0 %736  ;;  %vm1402_vm7 = vcmask 64512  }
 0x15e   : > { %v584_v8 = vadd.f32 %v576_v30, %v515_v52  ;;  %v842_v2 = vmul.f32 %v834_v58, %v2570_v56  ;;  %v841_v13 = vmul.f32 %v833_v23, %v2575_v32 }
 0x15f   : > { %v585_v22 = vadd.f32 %v577_v9, %v516_v50 }
 0x160   : > { %v597_v44 = vpop.permute.xlu1 %596  ;;  %v655_v59 = vadd.f32 %v647_v7, %v584_v8  ;;  %v850_v52 = vmul.f32 %v842_v2, %v2570_v56  ;;  %v849_v30 = vmul.f32 %v841_v13, %v2575_v32 }
 0x161   : > { %v656_v17 = vadd.f32 %v648_v27, %v585_v22  ;;  %v745_v1 = vpop.permute.xlu0 %744  ;;  %v2958_v22 = vld [vmem:[#allocation7_spill] sm:$0xff] }
 0x162   : > { %v750_v50 = vsel %vm746_vm15, %v737_v3, %v745_v1  ;;  %v754_v9 = vsel %vm746_vm15, %v745_v1, %v737_v3  ;;  %v857_v61 = vadd.f32 %v849_v30, %v2575_v32  ;;  %v2959_v30 = vld [vmem:[#allocation6_spill] sm:$0xff] }
 0x163   : > { %v767_v7 = vsel %vm2085_vm6, %v750_v50, 0.0 }
 0x164   : > { %v605_v20 = vpop.permute.xlu1 %604  ;;  %v791_v3 = vmul.f32 %v2958_v22, %v767_v7  ;;  %v865_v2 = vmul.f32 0.7978846, %v857_v61 }
 0x165   : > { %v610_v15 = vsel %vm2953_vm3, %v597_v44, %v605_v20  ;;  %v614_v49 = vsel %vm2954_vm4, %v605_v20, %v597_v44  ;;  %v716_v44 = vmul.f32 %v2956_v26, %v679_v47 }
 0x166   : > { %v627_v28 = vsel %vm2033_vm1, %v610_v15, 0.0  ;;  %v628_v53 = vsel %vm2374_vm14, %v614_v49, 0.0  ;;  %vm937_vm1 = vcmask 261120  }
 0x167   : > { %v651_v21 = vmul.f32 %v2286_v19, %v627_v28  ;;  %v652_v54 = vmul.f32 %v2286_v19, %v628_v53  ;;  %v693_v19 = vsel %vm200_vm12, %v683_v16, 0.0 }
 0x168   : > { %v733_v24 = vpop.permute.xlu1 %732  ;;  %v717_v48 = vmul.f32 %v2956_v26, %v693_v19 }
 0x169   : > { %v659_v36 = vadd.f32 %v651_v21, %v2336_v41  ;;  %v660_v40 = vadd.f32 %v652_v54, %v2338_v45  ;;  %v724_v45 = vadd.f32 %v716_v44, %v655_v59  ;;  %v2957_v54 = vld [vmem:[#allocation8_spill] sm:$0xff] }
 0x16a   : > { %v725_v43 = vadd.f32 %v717_v48, %v656_v17 }
 0x16c   : > { %v741_v10 = vpop.permute.xlu1 %740 }
 0x16d   : > { %v748_v12 = vsel %vm746_vm15, %v733_v24, %v741_v10  ;;  %v752_v41 = vsel %vm746_vm15, %v741_v10, %v733_v24 }
 0x16e   : > { %v763_v51 = vsel %vm2085_vm6, %v748_v12, 0.0  ;;  %v764_v35 = vsel %vm2445_vm11, %v752_v41, 0.0  ;;  %v684_v12 = vsel %vm677_vm13, %v2548_v33, %v2514_v63 }
 0x16f   : > { %v787_v29 = vmul.f32 %v2259_v62, %v763_v51  ;;  %v788_v31 = vmul.f32 %v2259_v62, %v764_v35  ;;  %v858_v62 = vadd.f32 %v850_v52, %v2570_v56 }
 0x170   : > { %v668_v11 = vpop.permute.xlu1 %667 }
 0x171   : > { %v795_v38 = vadd.f32 %v787_v29, %v724_v45  ;;  %v796_v20 = vadd.f32 %v788_v31, %v725_v43  ;;  %v866_v47 = vmul.f32 0.7978846, %v858_v62  ;;  %v695_v29 = vsel %vm200_vm12, %v684_v12, 0.0 }
 0x173   : > { %v2625_v15 = vadd.f32 %v2539_v4, %v795_v38  ;;  %v2628_v49 = vadd.f32 %v2539_v4, %v796_v20  ;;  %v768_v4 = vsel %vm2445_vm11, %v754_v9, 0.0  ;;  %1669 = vtanh.f32 %v866_v47 }
 0x174   : > { %v676_v16 = vpop.permute.xlu1 %675  ;;  %v792_v26 = vmul.f32 %v2958_v22, %v768_v4  ;;  %1671 = vtanh.f32 %v865_v2 }
 0x175   : > { %v681_v28 = vsel %vm677_vm13, %v668_v11, %v676_v16  ;;  %v685_v53 = vsel %vm677_vm13, %v676_v16, %v668_v11  ;;  %v836_v27 = vmul.f32 0.044715, %v2628_v49  ;;  %v835_v8 = vmul.f32 0.044715, %v2625_v15 }
 0x176   : > { %v697_v21 = vsel %vm200_vm12, %v685_v53, 0.0  ;;  %v720_v58 = vmul.f32 %v2957_v54, %v681_v28  ;;  %v827_v2 = vmul.f32 0.5, %v2625_v15 }
 0x177   : > { %v721_v23 = vmul.f32 %v2957_v54, %v697_v21  ;;  %v844_v24 = vmul.f32 %v836_v27, %v2628_v49  ;;  %v843_v17 = vmul.f32 %v835_v8, %v2625_v15 }
 0x178   : > { %v728_v19 = vadd.f32 %v720_v58, %v659_v36  ;;  %v815_v59 = vpop.permute.xlu1 %814 }
 0x179   : > { %v729_v44 = vadd.f32 %v721_v23, %v660_v40  ;;  %v852_v10 = vmul.f32 %v844_v24, %v2628_v49  ;;  %v851_v48 = vmul.f32 %v843_v17, %v2625_v15  ;;  %v680_v40 = vsel %vm677_vm13, %v2514_v63, %v2548_v33 }
 0x17a   : > { %v799_v13 = vadd.f32 %v791_v3, %v728_v19  ;;  %v718_v38 = vmul.f32 %v2959_v30, %v680_v40  ;;  %v719_v63 = vmul.f32 %v2959_v30, %v695_v29  ;;  %v828_v3 = vmul.f32 0.5, %v2628_v49 }
 0x17b   : > { %v800_v41 = vadd.f32 %v792_v26, %v729_v44  ;;  %v860_v36 = vadd.f32 %v852_v10, %v2628_v49  ;;  %v859_v35 = vadd.f32 %v851_v48, %v2625_v15 }
 0x17c   : > { %v2657_v45 = vadd.f32 %v815_v59, %v799_v13  ;;  %v735_v51 = vpop.permute.xlu1 %734  ;;  %v726_v62 = vadd.f32 %v718_v38, %v2451_v25  ;;  %v727_v7 = vadd.f32 %v719_v63, %v2453_v46 }
 0x17d   : > { %v2664_v1 = vadd.f32 %v815_v59, %v800_v41  ;;  %v868_v43 = vmul.f32 0.7978846, %v860_v36  ;;  %v867_v52 = vmul.f32 0.7978846, %v859_v35  ;;  %v1670_v39 = vpop.eup %1669  ;;  %v825_v59 = vmul.f32 0.5, %v2575_v32 }
 0x17e   : > { %v839_v31 = vmul.f32 0.044715, %v2657_v45  ;;  %v1672_v25 = vpop.eup %1671  ;;  %v882_v8 = vadd.f32 1.0, %v1670_v39  ;;  %v2962_v39 = vld [vmem:[#allocation10_spill] sm:$0xff] }
 0x17f   : > { %v840_v11 = vmul.f32 0.044715, %v2664_v1  ;;  %1673 = vtanh.f32 %v868_v43  ;;  %v881_v24 = vadd.f32 1.0, %v1672_v25 }
 0x180   : > { %v847_v20 = vmul.f32 %v839_v31, %v2657_v45  ;;  %v743_v50 = vpop.permute.xlu1 %742  ;;  %1675 = vtanh.f32 %v867_v52 }
 0x181   : > { %v848_v33 = vmul.f32 %v840_v11, %v2664_v1  ;;  %v749_v42 = vsel %vm746_vm15, %v735_v51, %v743_v50  ;;  %v753_v9 = vsel %vm746_vm15, %v743_v50, %v735_v51  ;;  %v889_v41 = vmul.f32 %v881_v24, %v825_v59 }
 0x182   : > { %v765_v16 = vsel %vm2085_vm6, %v749_v42, 0.0  ;;  %v766_v61 = vsel %vm2445_vm11, %v753_v9, 0.0  ;;  %v855_v4 = vmul.f32 %v847_v20, %v2657_v45  ;;  %v832_v50 = vmul.f32 0.5, %v2664_v1 }
 0x183   : > { %v789_v28 = vmul.f32 %v2479_v34, %v765_v16  ;;  %v790_v53 = vmul.f32 %v2479_v34, %v766_v61  ;;  %v856_v27 = vmul.f32 %v848_v33, %v2664_v1  ;;  %v826_v34 = vmul.f32 0.5, %v2570_v56 }
 0x184   : > { %v863_v46 = vadd.f32 %v855_v4, %v2657_v45  ;;  %v831_v42 = vmul.f32 0.5, %v2657_v45  ;;  %v2961_v4 = vmov 0.0   ;;  %vm1346_vm6 = vcmask 679512  }
 0x185   : > { %v797_v21 = vadd.f32 %v789_v28, %v726_v62  ;;  %v798_v54 = vadd.f32 %v790_v53, %v727_v7  ;;  %v864_v37 = vadd.f32 %v856_v27, %v2664_v1  ;;  %v890_v10 = vmul.f32 %v882_v8, %v826_v34  ;;  %v2960_v27 = vld [vmem:[#allocation9_spill] sm:$0xff] }
 0x186   : > { %v871_v12 = vmul.f32 0.7978846, %v863_v46 }
 0x187   : > { %v821_v5 = vadd.f32 %v2568_v55, %v797_v21  ;;  %v822_v58 = vadd.f32 %v2568_v55, %v798_v54  ;;  %v872_v44 = vmul.f32 0.7978846, %v864_v37 }
 0x189   : > { %v1674_v23 = vpop.eup %1673  ;;  %v838_v47 = vmul.f32 0.044715, %v822_v58  ;;  %v837_v17 = vmul.f32 0.044715, %v821_v5  ;;  %1677 = vtanh.f32 %v872_v44  ;;  %v830_v20 = vmul.f32 0.5, %v822_v58 }
 0x18a   : > { %v1676_v22 = vpop.eup %1675  ;;  %v884_v19 = vadd.f32 1.0, %v1674_v23  ;;  %1679 = vtanh.f32 %v871_v12  ;;  %v829_v33 = vmul.f32 0.5, %v821_v5 }
 0x18b   : > { %v883_v55 = vadd.f32 1.0, %v1676_v22  ;;  %v846_v26 = vmul.f32 %v838_v47, %v822_v58  ;;  %v845_v48 = vmul.f32 %v837_v17, %v821_v5 }
 0x18c   : > { %v892_v13 = vmul.f32 %v884_v19, %v828_v3 }
 0x18d   : > { %v891_v56 = vmul.f32 %v883_v55, %v827_v2  ;;  %v854_v36 = vmul.f32 %v846_v26, %v822_v58  ;;  %v853_v35 = vmul.f32 %v845_v48, %v821_v5 }
 0x18e   : > { %v1580_v51 = vpack.c.bf16 %v892_v13, %v890_v10 }
 0x18f   : > { %v1582_v40 = vpack.c.bf16 %v891_v56, %v889_v41  ;;  %v862_v49 = vadd.f32 %v854_v36, %v822_v58  ;;  %v861_v32 = vadd.f32 %v853_v35, %v821_v5 }
 0x190   : > { %1581 = vmatprep.subr.bf16.mxu0 %v1580_v51 }
 0x191   : > { %1583 = vmatpush1.bf16.msra.mxu0 %v1582_v40  ;;  %v870_v15 = vmul.f32 0.7978846, %v862_v49  ;;  %v869_v43 = vmul.f32 0.7978846, %v861_v32 }
 0x193   : > { %1681 = vtanh.f32 %v870_v15  ;;  %v1678_v29 = vpop.eup %1677 }
 0x194   : > { %1683 = vtanh.f32 %v869_v43  ;;  %v1680_v31 = vpop.eup %1679  ;;  %v888_v52 = vadd.f32 1.0, %v1678_v29 }
 0x195   : > { %v887_v30 = vadd.f32 1.0, %v1680_v31 }
 0x196   : > { %v896_v16 = vmul.f32 %v888_v52, %v832_v50 }
 0x197   : > { %v895_v7 = vmul.f32 %v887_v30, %v831_v42 }
 0x19d   : > { %v1682_v11 = vpop.eup %1681 }
 0x19e   : > { %v1684_v38 = vpop.eup %1683  ;;  %v886_v63 = vadd.f32 1.0, %v1682_v11 }
 0x19f   : > { %v885_v9 = vadd.f32 1.0, %v1684_v38 }
 0x1a0   : > { %v894_v62 = vmul.f32 %v886_v63, %v830_v20 }
 0x1a1   : > { %v893_v61 = vmul.f32 %v885_v9, %v829_v33 }
 0x1a2   : > { %v1584_v28 = vpack.c.bf16 %v896_v16, %v894_v62 }
 0x1a3   : > { %v1586_v53 = vpack.c.bf16 %v895_v7, %v893_v61 }
 0x1a4   : > { %1585 = vmatprep.subr.bf16.mxu0 %v1584_v28 }
 0x1a5   : > { %1587 = vmatpush1.bf16.msra.mxu0 %v1586_v53 }
 0x1a8   : > { %1560 = vmatmul.mubr.msk.f32.vlgmr.msra.gmra.mrb[0].mxu0 %vm937_vm1, %v2960_v27 }
 0x1a9   : > { %1024 = vmatprep.mubr.f32.mxu0 %v2961_v4 }
 0x1ac   : > { %1561 = vmatmul.mubr.msk.f32.gmra.mrb[2].mxu0 %vm937_vm1, %v2962_v39 }
 0x1ad   : > { %1030 = vmatprep.mubr.f32.mxu0 %v2961_v4 }
 0x1b0   : > { %1562 = vmatmul.mubr.msk.f32.gmra.mrb[4].mxu0 %vm937_vm1, %v2406_v18  ;;  %v1775_v18 = vmov 74  }
 0x1b1   : > { %1036 = vmatprep.mubr.f32.mxu0 %v2961_v4  ;;  %1665 = vset.pattern.permute.xlu0 %v1775_v18 }
 0x1b2   : > { %1666 = vset.pattern.permute.xlu1 %v1775_v18  ;;  %v905_v25 = vpop.permute.xlu0 %904 }
 0x1b4   : > { %1563 = vmatmul.mubr.msk.f32.gmra.mrb[6].mxu0 %vm937_vm1, %v2434_v0  ;;  %v2716_v0 = vld [vmem:[%s2908_s1] sm:$0xff] }
 0x1b5   : > { %1042 = vmatprep.mubr.f32.mxu0 %v2961_v4  ;;  %1212 = vperm.xlu0 %1665, %v2716_v0  }
 0x1b8   : > { %1564 = vmatmul.mubr.msk.f32.gmra.mrb[8].mxu0 %vm937_vm1, %v2411_v6  ;;  %v2722_v6 = vld [vmem:[%s2908_s1 + $0x8] sm:$0xff] }
 0x1b9   : > { %1048 = vmatprep.mubr.f32.mxu0 %v2961_v4  ;;  %1216 = vperm.xlu1 %1666, %v2722_v6  }
 0x1bc   : > { %1565 = vmatmul.mubr.msk.f32.gmra.mrb[10].mxu0 %vm937_vm1, %v2474_v60  ;;  %v2734_v60 = vld [vmem:[%s2908_s1 + $0x18] sm:$0xff] }
 0x1bd   : > { %1054 = vmatprep.mubr.f32.mxu0 %v2961_v4  ;;  %1224 = vperm.xlu0 %1665, %v2734_v60  }
 0x1c0   : > { %1566 = vmatmul.mubr.msk.f32.gmra.mrb[12].mxu0 %vm937_vm1, %v2439_v14  ;;  %v2728_v14 = vld [vmem:[%s2908_s1 + $0x10] sm:$0xff] }
 0x1c1   : > { %1060 = vmatprep.mubr.f32.mxu0 %v2961_v4  ;;  %1220 = vperm.xlu1 %1666, %v2728_v14  }
 0x1c4   : > { %1567 = vmatmul.mubr.msk.f32.gmra.mrb[14].mxu0 %vm937_vm1, %v2493_v57  ;;  %v900_v57 = vpop.permute.xlu1 %899 }
 0x1c8   : > { %v910_v34 = vpop.permute.xlu1 %909  ;;  %v920_v63 = vpop.permute.xlu0 %919 }
 0x1cc   : > { %v915_v36 = vpop.permute.xlu1 %914 }
 0x27b   : > { %v1020_v45 = vpop.f32.mrb[0].mxu0 }
 0x27c   : > { %v1021_v1 = vadd.f32 %v1020_v45, %v900_v57  ;;  %v1022_v21 = vpop.f32.mrb[1].mxu0 }
 0x27d   : > { %v2737_v54 = vadd.f32 %v1022_v21, %v900_v57  ;;  %v925_v21 = vpop.permute.xlu1 %924 }
 0x27e   : > { %v1083_v5 = vmul.f32 0.044715, %v1021_v1  ;;  %v1067_v57 = vmul.f32 0.5, %v1021_v1 }
 0x27f   : > { %v1084_v58 = vmul.f32 0.044715, %v2737_v54  ;;  %v1026_v37 = vpop.f32.mrb[2].mxu0 }
 0x280   : > { %v1099_v8 = vmul.f32 %v1083_v5, %v1021_v1  ;;  %v1027_v46 = vadd.f32 %v1026_v37, %v905_v25  ;;  %v1028_v23 = vpop.f32.mrb[3].mxu0  ;;  %v1068_v37 = vmul.f32 0.5, %v2737_v54 }
 0x281   : > { %v2740_v24 = vadd.f32 %v1028_v23, %v905_v25  ;;  %v1100_v47 = vmul.f32 %v1084_v58, %v2737_v54 }
 0x282   : > { %v1085_v22 = vmul.f32 0.044715, %v1027_v46  ;;  %v1115_v3 = vmul.f32 %v1099_v8, %v1021_v1 }
 0x283   : > { %v1086_v19 = vmul.f32 0.044715, %v2740_v24  ;;  %v1032_v59 = vpop.f32.mrb[4].mxu0  ;;  %v1116_v17 = vmul.f32 %v1100_v47, %v2737_v54  ;;  %v1069_v47 = vmul.f32 0.5, %v1027_v46 }
 0x284   : > { %v1101_v2 = vmul.f32 %v1085_v22, %v1027_v46  ;;  %v2745_v55 = vadd.f32 %v1032_v59, %v910_v34  ;;  %v1034_v26 = vpop.f32.mrb[5].mxu0  ;;  %v1131_v44 = vadd.f32 %v1115_v3, %v1021_v1 }
 0x285   : > { %v2747_v10 = vadd.f32 %v1034_v26, %v910_v34  ;;  %v1102_v13 = vmul.f32 %v1086_v19, %v2740_v24  ;;  %v1132_v48 = vadd.f32 %v1116_v17, %v2737_v54 }
 0x286   : > { %v1087_v12 = vmul.f32 0.044715, %v2745_v55  ;;  %v1117_v41 = vmul.f32 %v1101_v2, %v1027_v46  ;;  %v1147_v56 = vmul.f32 0.7978846, %v1131_v44  ;;  %v1070_v2 = vmul.f32 0.5, %v2740_v24 }
 0x287   : > { %v1088_v51 = vmul.f32 0.044715, %v2747_v10  ;;  %v1038_v35 = vpop.f32.mrb[6].mxu0  ;;  %v1118_v40 = vmul.f32 %v1102_v13, %v2740_v24  ;;  %v1148_v49 = vmul.f32 0.7978846, %v1132_v48 }
 0x288   : > { %v1103_v32 = vmul.f32 %v1087_v12, %v2745_v55  ;;  %v2755_v15 = vadd.f32 %v1038_v35, %v915_v36  ;;  %v1040_v43 = vpop.f32.mrb[7].mxu0  ;;  %v1133_v29 = vadd.f32 %v1117_v41, %v1027_v46  ;;  %1685 = vtanh.f32 %v1147_v56  ;;  %v930_v46 = vpop.permute.xlu0 %929 }
 0x289   : > { %v1104_v31 = vmul.f32 %v1088_v51, %v2747_v10  ;;  %v2758_v52 = vadd.f32 %v1040_v43, %v915_v36  ;;  %v1134_v11 = vadd.f32 %v1118_v40, %v2740_v24  ;;  %1687 = vtanh.f32 %v1148_v49 }
 0x28a   : > { %v1119_v30 = vmul.f32 %v1103_v32, %v2745_v55  ;;  %v1089_v38 = vmul.f32 0.044715, %v2755_v15  ;;  %v1149_v20 = vmul.f32 0.7978846, %v1133_v29  ;;  %v1071_v32 = vmul.f32 0.5, %v2745_v55 }
 0x28b   : > { %v1120_v50 = vmul.f32 %v1104_v31, %v2747_v10  ;;  %v1090_v33 = vmul.f32 0.044715, %v2758_v52  ;;  %v1044_v42 = vpop.f32.mrb[8].mxu0  ;;  %v1150_v9 = vmul.f32 0.7978846, %v1134_v11 }
 0x28c   : > { %v1105_v62 = vmul.f32 %v1089_v38, %v2755_v15  ;;  %v2766_v16 = vadd.f32 %v1044_v42, %v920_v63  ;;  %v1046_v61 = vpop.f32.mrb[9].mxu0  ;;  %1689 = vtanh.f32 %v1149_v20  ;;  %v1135_v7 = vadd.f32 %v1119_v30, %v2745_v55  ;;  %v935_v20 = vpop.permute.xlu1 %934 }
 0x28d   : > { %v1106_v28 = vmul.f32 %v1090_v33, %v2758_v52  ;;  %v2770_v53 = vadd.f32 %v1046_v61, %v920_v63  ;;  %1691 = vtanh.f32 %v1150_v9  ;;  %v1136_v27 = vadd.f32 %v1120_v50, %v2747_v10 }
 0x28e   : > { %v1121_v39 = vmul.f32 %v1105_v62, %v2755_v15  ;;  %v1091_v18 = vmul.f32 0.044715, %v2766_v16  ;;  %v1151_v45 = vmul.f32 0.7978846, %v1135_v7 }
 0x28f   : > { %v1122_v25 = vmul.f32 %v1106_v28, %v2758_v52  ;;  %v1092_v5 = vmul.f32 0.044715, %v2770_v53  ;;  %v1050_v58 = vpop.f32.mrb[10].mxu0  ;;  %v1152_v8 = vmul.f32 0.7978846, %v1136_v27 }
 0x290   : > { %v2778_v23 = vadd.f32 %v1050_v58, %v925_v21  ;;  %v1052_v34 = vpop.f32.mrb[11].mxu0  ;;  %v1137_v22 = vadd.f32 %v1121_v39, %v2755_v15  ;;  %1693 = vtanh.f32 %v1151_v45  ;;  %v1107_v17 = vmul.f32 %v1091_v18, %v2766_v16 }
 0x291   : > { %v1108_v3 = vmul.f32 %v1092_v5, %v2770_v53  ;;  %v2782_v1 = vadd.f32 %v1052_v34, %v925_v21  ;;  %v1138_v19 = vadd.f32 %v1122_v25, %v2758_v52  ;;  %1695 = vtanh.f32 %v1152_v8 }
 0x292   : > { %v1686_v59 = vpop.eup %1685  ;;  %v1093_v54 = vmul.f32 0.044715, %v2778_v23  ;;  %v1153_v26 = vmul.f32 0.7978846, %v1137_v22  ;;  %v1123_v29 = vmul.f32 %v1107_v17, %v2766_v16 }
 0x293   : > { %v1688_v44 = vpop.eup %1687  ;;  %v1124_v13 = vmul.f32 %v1108_v3, %v2770_v53  ;;  %v1094_v48 = vmul.f32 0.044715, %v2782_v1  ;;  %v1056_v12 = vpop.f32.mrb[12].mxu0  ;;  %v1179_v41 = vadd.f32 1.0, %v1686_v59  ;;  %v1154_v56 = vmul.f32 0.7978846, %v1138_v19 }
 0x294   : > { %v1109_v36 = vmul.f32 %v1093_v54, %v2778_v23  ;;  %v2791_v51 = vadd.f32 %v1056_v12, %v930_v46  ;;  %v1058_v35 = vpop.f32.mrb[13].mxu0  ;;  %v1180_v40 = vadd.f32 1.0, %v1688_v44  ;;  %1697 = vtanh.f32 %v1153_v26 }
 0x295   : > { %v1110_v49 = vmul.f32 %v1094_v48, %v2782_v1  ;;  %v2794_v24 = vadd.f32 %v1058_v35, %v930_v46  ;;  %1699 = vtanh.f32 %v1154_v56  ;;  %v1195_v30 = vmul.f32 %v1179_v41, %v1067_v57 }
 0x296   : > { %v1690_v43 = vpop.eup %1689  ;;  %v1125_v31 = vmul.f32 %v1109_v36, %v2778_v23  ;;  %v1095_v11 = vmul.f32 0.044715, %v2791_v51  ;;  %v1140_v9 = vadd.f32 %v1124_v13, %v2770_v53  ;;  %v1196_v28 = vmul.f32 %v1180_v40, %v1068_v37 }
 0x297   : > { %v1692_v38 = vpop.eup %1691  ;;  %v1126_v50 = vmul.f32 %v1110_v49, %v2782_v1  ;;  %v1096_v63 = vmul.f32 0.044715, %v2794_v24  ;;  %v1062_v33 = vpop.f32.mrb[14].mxu0  ;;  %v1181_v42 = vadd.f32 1.0, %v1690_v43  ;;  %v1139_v58 = vadd.f32 %v1123_v29, %v2766_v16 }
 0x298   : > { %v1111_v55 = vmul.f32 %v1095_v11, %v2791_v51  ;;  %v2804_v62 = vadd.f32 %v1062_v33, %v935_v20  ;;  %v1064_v61 = vpop.f32.mrb[15].mxu0  ;;  %v1182_v7 = vadd.f32 1.0, %v1692_v38  ;;  %v1156_v5 = vmul.f32 0.7978846, %v1140_v9 }
 0x299   : > { %v1112_v27 = vmul.f32 %v1096_v63, %v2794_v24  ;;  %v2807_v39 = vadd.f32 %v1064_v61, %v935_v20  ;;  %v1197_v18 = vmul.f32 %v1181_v42, %v1069_v47  ;;  %v1142_v57 = vadd.f32 %v1126_v50, %v2782_v1 }
 0x29a   : > { %v1694_v45 = vpop.eup %1693  ;;  %v1097_v21 = vmul.f32 0.044715, %v2804_v62  ;;  %v1198_v25 = vmul.f32 %v1182_v7, %v1070_v2  ;;  %v1072_v37 = vmul.f32 0.5, %v2747_v10  ;;  %v1073_v3 = vmul.f32 0.5, %v2755_v15 }
 0x29b   : > { %v1696_v8 = vpop.eup %1695  ;;  %v1098_v34 = vmul.f32 0.044715, %v2807_v39  ;;  %v1590_v22 = vpack.c.bf16 %v1197_v18, %v1195_v30  ;;  %v1128_v19 = vmul.f32 %v1112_v27, %v2794_v24  ;;  %v1158_v17 = vmul.f32 0.7978846, %v1142_v57 }
 0x29c   : > { %v1113_v47 = vmul.f32 %v1097_v21, %v2804_v62  ;;  %v1588_v59 = vpack.c.bf16 %v1198_v25, %v1196_v28  ;;  %v1183_v2 = vadd.f32 1.0, %v1694_v45  ;;  %1701 = vtanh.f32 %v1156_v5 }
 0x29d   : > { %v1114_v54 = vmul.f32 %v1098_v34, %v2807_v39  ;;  %v1141_v26 = vadd.f32 %v1125_v31, %v2778_v23  ;;  %v1127_v46 = vmul.f32 %v1111_v55, %v2791_v51  ;;  %v1184_v13 = vadd.f32 1.0, %v1696_v8 }
 0x29e   : > { %v1698_v44 = vpop.eup %1697  ;;  %1589 = vmatprep.subr.bf16.mxu1 %v1588_v59  ;;  %1703 = vtanh.f32 %v1158_v17  ;;  %v1155_v10 = vmul.f32 0.7978846, %v1139_v58  ;;  %v1129_v48 = vmul.f32 %v1113_v47, %v2804_v62  ;;  %v1074_v36 = vmul.f32 0.5, %v2758_v52 }
 0x29f   : > { %v1700_v15 = vpop.eup %1699  ;;  %v1130_v12 = vmul.f32 %v1114_v54, %v2807_v39  ;;  %1591 = vmatpush1.bf16.msra.mxu1 %v1590_v22  ;;  %v1185_v41 = vadd.f32 1.0, %v1698_v44  ;;  %v1157_v56 = vmul.f32 0.7978846, %v1141_v26  ;;  %v1144_v40 = vadd.f32 %v1128_v19, %v2794_v24 }
 0x2a0   : > { %v1186_v35 = vadd.f32 1.0, %v1700_v15  ;;  %1705 = vtanh.f32 %v1155_v10  ;;  %v1199_v49 = vmul.f32 %v1183_v2, %v1071_v32  ;;  %v1200_v31 = vmul.f32 %v1184_v13, %v1072_v37 }
 0x2a1   : > { %v1201_v43 = vmul.f32 %v1185_v41, %v1073_v3  ;;  %1707 = vtanh.f32 %v1157_v56  ;;  %v1146_v29 = vadd.f32 %v1130_v12, %v2807_v39  ;;  %v1160_v30 = vmul.f32 0.7978846, %v1144_v40 }
 0x2a2   : > { %v1202_v11 = vmul.f32 %v1186_v35, %v1074_v36  ;;  %v1143_v38 = vadd.f32 %v1127_v46, %v2791_v51  ;;  %v1145_v63 = vadd.f32 %v1129_v48, %v2804_v62  ;;  %v1076_v61 = vmul.f32 0.5, %v2770_v53 }
 0x2a3   : > { %v1594_v20 = vpack.c.bf16 %v1201_v43, %v1199_v49  ;;  %v1162_v50 = vmul.f32 0.7978846, %v1146_v29  ;;  %1709 = vtanh.f32 %v1160_v30  ;;  %v1078_v7 = vmul.f32 0.5, %v2782_v1 }
 0x2a4   : > { %v1592_v33 = vpack.c.bf16 %v1202_v11, %v1200_v31  ;;  %v1159_v52 = vmul.f32 0.7978846, %v1143_v38  ;;  %v1161_v42 = vmul.f32 0.7978846, %v1145_v63  ;;  %v1075_v25 = vmul.f32 0.5, %v2766_v16 }
 0x2a5   : > { %1711 = vtanh.f32 %v1162_v50  ;;  %v1077_v5 = vmul.f32 0.5, %v2778_v23  ;;  %v1080_v47 = vmul.f32 0.5, %v2794_v24  ;;  %v1082_v59 = vmul.f32 0.5, %v2807_v39 }
 0x2a6   : > { %1593 = vmatprep.subr.bf16.mxu1 %v1592_v33  ;;  %1713 = vtanh.f32 %v1159_v52  ;;  %v1702_v32 = vpop.eup %1701  ;;  %v1079_v16 = vmul.f32 0.5, %v2791_v51  ;;  %v1081_v44 = vmul.f32 0.5, %v2804_v62  ;;  %v1213_v51 = vpop.permute.xlu0 %1212 }
 0x2a7   : > { %1595 = vmatpush1.bf16.msra.mxu1 %v1594_v20  ;;  %1715 = vtanh.f32 %v1161_v42  ;;  %v1188_v55 = vadd.f32 1.0, %v1702_v32  ;;  %v1217_v62 = vpop.permute.xlu1 %1216  ;;  %v183_v32 = vld [vmem:[%s2908_s1] sm:$0x1] }
 0x2a8   : > { %v1704_v9 = vpop.eup %1703 }
 0x2a9   : > { %v1190_v28 = vadd.f32 1.0, %v1704_v9  ;;  %v1204_v57 = vmul.f32 %v1188_v55, %v1076_v61 }
 0x2aa   : > { %v1706_v27 = vpop.eup %1705  ;;  %v1225_v38 = vpop.permute.xlu0 %1224 }
 0x2ab   : > { %v1708_v18 = vpop.eup %1707  ;;  %v1206_v45 = vmul.f32 %v1190_v28, %v1078_v7  ;;  %v1187_v21 = vadd.f32 1.0, %v1706_v27 }
 0x2ac   : > { %v1189_v58 = vadd.f32 1.0, %v1708_v18 }
 0x2ad   : > { %v1596_v8 = vpack.c.bf16 %v1206_v45, %v1204_v57  ;;  %v1710_v34 = vpop.eup %1709  ;;  %v1203_v22 = vmul.f32 %v1187_v21, %v1075_v25 }
 0x2ae   : > { %v1205_v37 = vmul.f32 %v1189_v58, %v1077_v5  ;;  %v1192_v53 = vadd.f32 1.0, %v1710_v34 }
 0x2af   : > { %v1712_v3 = vpop.eup %1711  ;;  %1597 = vmatprep.subr.bf16.mxu1 %v1596_v8 }
 0x2b0   : > { %v1714_v19 = vpop.eup %1713  ;;  %v1598_v1 = vpack.c.bf16 %v1205_v37, %v1203_v22  ;;  %v1194_v17 = vadd.f32 1.0, %v1712_v3  ;;  %v1208_v23 = vmul.f32 %v1192_v53, %v1080_v47 }
 0x2b1   : > { %v1716_v54 = vpop.eup %1715  ;;  %v1191_v2 = vadd.f32 1.0, %v1714_v19 }
 0x2b2   : > { %1599 = vmatpush1.bf16.msra.mxu1 %v1598_v1  ;;  %v1210_v26 = vmul.f32 %v1194_v17, %v1082_v59  ;;  %v1193_v46 = vadd.f32 1.0, %v1716_v54 }
 0x2b3   : > { %v1207_v10 = vmul.f32 %v1191_v2, %v1079_v16 }
 0x2b4   : > { %v1600_v13 = vpack.c.bf16 %v1210_v26, %v1208_v23  ;;  %v1209_v15 = vmul.f32 %v1193_v46, %v1081_v44 }
 0x2b6   : > { %1601 = vmatprep.subr.bf16.mxu1 %v1600_v13  ;;  %v1602_v48 = vpack.c.bf16 %v1209_v15, %v1207_v10  ;;  %v2963_v10 = vlaneseq }
 0x2b8   : > { %1603 = vmatpush1.bf16.msra.mxu1 %v1602_v48  ;;  %v1375_v15 = vshrl.u32 %v2963_v10, 7  ;;  %v1739_v10 = vld [vmem:[%s1841_s26 + $0x10] sm:$0xff] }
 0x2bb   : > { %1568 = vmatmul.mubr.msk.f32.vlgmr.msra.gmra.mrb[0].mxu1 %vm1227_vm5, %v2716_v0 }
 0x2bc   : > { %1306 = vmatprep.mubr.f32.mxu1 %v2961_v4 }
 0x2bf   : > { %1569 = vmatmul.mubr.msk.f32.gmra.mrb[2].mxu1 %vm1227_vm5, %v2722_v6 }
 0x2c0   : > { %1312 = vmatprep.mubr.f32.mxu1 %v2961_v4 }
 0x2c3   : > { %1570 = vmatmul.mubr.msk.f32.gmra.mrb[4].mxu1 %vm1227_vm5, %v2728_v14 }
 0x2c4   : > { %1318 = vmatprep.mubr.f32.mxu1 %v2961_v4  ;;  %v1221_v4 = vpop.permute.xlu1 %1220 }
 0x2c7   : > { %1571 = vmatmul.mubr.msk.f32.gmra.mrb[6].mxu1 %vm1227_vm5, %v2734_v60 }
 0x38e   : > { %v1302_v24 = vpop.f32.mrb[0].mxu1 }
 0x38f   : > { %v2842_v39 = vadd.f32 %v1302_v24, %v1213_v51  ;;  %v1304_v12 = vpop.f32.mrb[1].mxu1 }
 0x390   : > { %v2844_v41 = vadd.f32 %v1304_v12, %v1213_v51 }
 0x392   : > { %v1325_v56 = vadd.f32 %v2844_v41, %v2842_v39  ;;  %v1308_v36 = vpop.f32.mrb[2].mxu1 }
 0x393   : > { %v2848_v35 = vadd.f32 %v1308_v36, %v1217_v62  ;;  %v1310_v40 = vpop.f32.mrb[3].mxu1 }
 0x394   : > { %v2850_v49 = vadd.f32 %v1310_v40, %v1217_v62  ;;  %1326 = vadd.xlane.f32.xlu1 %v1325_v56  ;;  %v1376_v62 = vsub.s32 0, %v1375_v15 }
 0x396   : > { %v1328_v43 = vadd.f32 %v2850_v49, %v2848_v35  ;;  %v1314_v29 = vpop.f32.mrb[4].mxu1 }
 0x397   : > { %v2854_v31 = vadd.f32 %v1314_v29, %v1221_v4  ;;  %v1316_v11 = vpop.f32.mrb[5].mxu1 }
 0x398   : > { %v2856_v30 = vadd.f32 %v1316_v11, %v1221_v4  ;;  %1329 = vadd.xlane.f32.xlu0 %v1328_v43 }
 0x39a   : > { %v1331_v20 = vadd.f32 %v2856_v30, %v2854_v31  ;;  %v1320_v50 = vpop.f32.mrb[6].mxu1 }
 0x39b   : > { %v2860_v63 = vadd.f32 %v1320_v50, %v1225_v38  ;;  %v1322_v33 = vpop.f32.mrb[7].mxu1 }
 0x39c   : > { %v2862_v52 = vadd.f32 %v1322_v33, %v1225_v38  ;;  %1332 = vadd.xlane.f32.xlu0 %v1331_v20 }
 0x39e   : > { %v1334_v42 = vadd.f32 %v2862_v52, %v2860_v63 }
 0x3a0   : > { %1335 = vadd.xlane.f32.xlu1 %v1334_v42 }
 0x3b2   : > { %1361 = vrot.lane.b32.xlu0 %v183_v32, %s1772_s7  ;;  %s1776_s7 = smov 8  }
 0x421   : > { %v1327_v9 = vpop.xlane.xlu1 %1326 }
 0x422   : > { %v1338_v61 = vmul.f32 0.00390625, %v1327_v9 }
 0x424   : > { %v1342_v18 = vmul.f32 %v2716_v0, %v1338_v61 }
 0x425   : > { %v1330_v55 = vpop.xlane.xlu0 %1329 }
 0x426   : > { %v1339_v7 = vmul.f32 0.00390625, %v1330_v55  ;;  %v1347_v5 = vsel %vm1346_vm6, %v1342_v18, 0.0  ;;  %v1778_v55 = vmov 91  }
 0x427   : > { %1667 = vset.pattern.permute.xlu0 %v1778_v55  ;;  %1668 = vset.pattern.permute.xlu1 %v1778_v55 }
 0x428   : > { %v1343_v28 = vmul.f32 %v2722_v6, %v1339_v7 }
 0x429   : > { %v1333_v27 = vpop.xlane.xlu0 %1332 }
 0x42a   : > { %v1340_v57 = vmul.f32 0.00390625, %v1333_v27  ;;  %v1348_v45 = vsel %vm1346_vm6, %v1343_v28, 0.0 }
 0x42b   : > { %v1349_v34 = vadd.f32 %v1348_v45, %v1347_v5 }
 0x42c   : > { %v1344_v21 = vmul.f32 %v2728_v14, %v1340_v57 }
 0x42d   : > { %v1336_v25 = vpop.xlane.xlu1 %1335  ;;  %v1362_v54 = vpop.permute.xlu0 %1361 }
 0x42e   : > { %v1350_v58 = vsel %vm1346_vm6, %v1344_v21, 0.0  ;;  %v1341_v8 = vmul.f32 0.00390625, %v1336_v25 }
 0x42f   : > { %v1351_v37 = vadd.f32 %v1350_v58, %v1349_v34 }
 0x430   : > { %v1345_v22 = vmul.f32 %v2734_v60, %v1341_v8 }
 0x432   : > { %v1352_v3 = vsel %vm1346_vm6, %v1345_v22, 0.0 }
 0x433   : > { %v1353_v53 = vadd.f32 %v1352_v3, %v1351_v37 }
 0x435   : > { %v1354_v19 = vrot.slane %v1353_v53, 4 }
 0x437   : > { %v1355_v1 = vadd.f32 %v1354_v19, %v1353_v53 }
 0x439   : > { %v1356_v47 = vrot.slane %v1355_v1, 2 }
 0x43b   : > { %v1357_v59 = vadd.f32 %v1356_v47, %v1355_v1 }
 0x43d   : > { %v1358_v17 = vrot.slane %v1357_v59, 1 }
 0x43f   : > { %v1359_v16 = vadd.f32 %v1358_v17, %v1357_v59 }
 0x441   : > { %v1364_v2 = vadd.f32 %v1362_v54, %v1359_v16 }
 0x443   : > { %v1366_v23 = vmul.f32 0.044715, %v1364_v2  ;;  %v1365_v51 = vmul.f32 0.5, %v1364_v2 }
 0x445   : > { %v1367_v26 = vmul.f32 %v1366_v23, %v1364_v2 }
 0x447   : > { %v1368_v44 = vmul.f32 %v1367_v26, %v1364_v2 }
 0x449   : > { %v1369_v46 = vadd.f32 %v1368_v44, %v1364_v2 }
 0x44b   : > { %v1370_v13 = vmul.f32 0.7978846, %v1369_v46 }
 0x44d   : > { %1717 = vtanh.f32 %v1370_v13 }
 0x457   : > { %v1718_v48 = vpop.eup %1717 }
 0x458   : > { %v1372_v24 = vadd.f32 1.0, %v1718_v48  ;;  %v1740_v48 = vld [vmem:[%s1841_s26 + $0x18] sm:$0xff] }
 0x45a   : > { %v1373_v12 = vmul.f32 %v1372_v24, %v1365_v51  ;;  %v1741_v24 = vld [vmem:[%s1841_s26] sm:$0xff] }
 0x45c   : > { %v1377_v56 = vrot.slane %v1373_v12, %v1376_v62 }
 0x45e   : > { %1379 = vrot.lane.b32.xlu1 %v1377_v56, %s1776_s7  ;;  %v1743_v56 = vld [vmem:[%s1841_s26 + $0x20] sm:$0xff] }
 0x4d0   : > { %v1380_v36 = vpop.permute.xlu1 %1379 }
 0x4d1   : > { %v1382_v40 = vmul.f32 %v2716_v0, %v1380_v36  ;;  %v1383_v4 = vmul.f32 %v2722_v6, %v1380_v36  ;;  %v1384_v43 = vmul.f32 %v2728_v14, %v1380_v36  ;;  %v1385_v29 = vmul.f32 %v2734_v60, %v1380_v36 }
 0x4d3   : > { %1392 = vrot.lane.b32.xlu0 %v1383_v4, %s1777_s13  ;;  %1390 = vrot.lane.b32.xlu1 %v1382_v40, %s1777_s13  ;;  %v1744_v40 = vld [vmem:[%s1841_s26 + $0x28] sm:$0xff] }
 0x4d7   : > { %1396 = vrot.lane.b32.xlu0 %v1385_v29, %s1777_s13  ;;  %1394 = vrot.lane.b32.xlu1 %v1384_v43, %s1777_s13 }
 0x545   : > { %v1393_v11 = vpop.permute.xlu0 %1392  ;;  %v1391_v38 = vpop.permute.xlu1 %1390 }
 0x546   : > { %v1406_v20 = vsel %vm1402_vm7, %v1393_v11, 0.0  ;;  %v1403_v50 = vsel %vm1402_vm7, %v1391_v38, 0.0  ;;  %v1745_v38 = vld [vmem:[%s1841_s26 + $0x30] sm:$0xff] }
 0x547   : > { %1407 = vadd.xlane.f32.xlu0 %v1406_v20  ;;  %1404 = vadd.xlane.f32.xlu1 %v1403_v50  ;;  %v1746_v20 = vld [vmem:[%s1841_s26 + $0x38] sm:$0xff] }
 0x549   : > { %v1397_v33 = vpop.permute.xlu0 %1396  ;;  %v1395_v42 = vpop.permute.xlu1 %1394 }
 0x54a   : > { %v1412_v32 = vsel %vm1402_vm7, %v1397_v33, 0.0  ;;  %v1409_v9 = vsel %vm1402_vm7, %v1395_v42, 0.0 }
 0x54b   : > { %1413 = vadd.xlane.f32.xlu1 %v1412_v32  ;;  %1410 = vadd.xlane.f32.xlu0 %v1409_v9 }
 0x5d4   : > { %v1408_v61 = vpop.xlane.xlu0 %1407  ;;  %v1405_v7 = vpop.xlane.xlu1 %1404 }
 0x5d5   : > { %v1416_v28 = vadd.f32 %v2722_v6, %v1408_v61  ;;  %v1415_v27 = vadd.f32 %v2716_v0, %v1405_v7 }
 0x5d7   : > { %v1573_v18 = vmul.f32 -1.442695, %v1416_v28  ;;  %v1572_v57 = vmul.f32 -1.442695, %v1415_v27 }
 0x5d8   : > { %v1411_v45 = vpop.xlane.xlu0 %1410  ;;  %v1414_v21 = vpop.xlane.xlu1 %1413 }
 0x5d9   : > { %1719 = vpow2.f32 %v1573_v18  ;;  %v1417_v25 = vadd.f32 %v2728_v14, %v1411_v45  ;;  %v1418_v5 = vadd.f32 %v2734_v60, %v1414_v21 }
 0x5da   : > { %1721 = vpow2.f32 %v1572_v57 }
 0x5db   : > { %v1574_v58 = vmul.f32 -1.442695, %v1417_v25  ;;  %v1575_v8 = vmul.f32 -1.442695, %v1418_v5 }
 0x5dd   : > { %1723 = vpow2.f32 %v1574_v58 }
 0x5de   : > { %1725 = vpow2.f32 %v1575_v8 }
 0x5e3   : > { %v1720_v34 = vpop.eup %1719 }
 0x5e4   : > { %v1722_v22 = vpop.eup %1721  ;;  %v1432_v37 = vadd.f32 1.0, %v1720_v34 }
 0x5e5   : > { %v1431_v6 = vadd.f32 1.0, %v1722_v22 }
 0x5e6   : > { %1727 = vrcp.f32 %v1432_v37 }
 0x5e7   : > { %v1724_v0 = vpop.eup %1723  ;;  %1729 = vrcp.f32 %v1431_v6 }
 0x5e8   : > { %v1726_v3 = vpop.eup %1725  ;;  %v1433_v53 = vadd.f32 1.0, %v1724_v0 }
 0x5e9   : > { %v1434_v19 = vadd.f32 1.0, %v1726_v3 }
 0x5ea   : > { %1731 = vrcp.f32 %v1433_v53 }
 0x5eb   : > { %1733 = vrcp.f32 %v1434_v19 }
 0x5f0   : > { %v1728_v14 = vpop.eup %1727 }
 0x5f1   : > { %v1730_v1 = vpop.eup %1729  ;;  %v1444_v60 = vadd.f32 1.0, %v1728_v14 }
 0x5f2   : > { %v1443_v47 = vadd.f32 1.0, %v1730_v1 }
 0x5f3   : > { %1454 = vperm.xlu1 %1668, %v1444_v60  }
 0x5f4   : > { %v1732_v59 = vpop.eup %1731  ;;  %1449 = vperm.xlu0 %1667, %v1443_v47  }
 0x5f5   : > { %v1445_v17 = vadd.f32 1.0, %v1732_v59  ;;  %v1734_v54 = vpop.eup %1733 }
 0x5f6   : > { %v1446_v16 = vadd.f32 1.0, %v1734_v54 }
 0x5f7   : > { %1459 = vperm.xlu1 %1668, %v1445_v17  }
 0x5fb   : > { %1464 = vperm.xlu1 %1668, %v1446_v16  }
 0x672   : > { %v1455_v2 = vpop.permute.xlu1 %1454 }
 0x673   : > { %v1450_v23 = vpop.permute.xlu0 %1449  ;;  %v1469_v26 = vmul.f32 %v1455_v2, %v2848_v35  ;;  %v1470_v44 = vmul.f32 %v1455_v2, %v2850_v49  ;;  %v1742_v35 = vld [vmem:[%s1841_s26 + $0x8] sm:$0xff] }
 0x674   : > { %v1467_v46 = vmul.f32 %v1450_v23, %v2842_v39  ;;  %v1468_v13 = vmul.f32 %v1450_v23, %v2844_v41 }
 0x675   : > { %v1477_v15 = vadd.f32 %v1739_v10, %v1469_v26  ;;  %v1478_v51 = vadd.f32 %v1740_v48, %v1470_v44 }
 0x676   : > { %v1475_v62 = vadd.f32 %v1741_v24, %v1467_v46  ;;  %v1476_v12 = vadd.f32 %v1742_v35, %v1468_v13  ;;  %v1460_v49 = vpop.permute.xlu1 %1459 }
 0x677   : > { %v1471_v39 = vmul.f32 %v1460_v49, %v2854_v31  ;;  %v1472_v41 = vmul.f32 %v1460_v49, %v2856_v30  ;;  %1485 = vst [vmem:[%s177_s17 + $0x10] sm:$0xff] %v1477_v15  ;;  %1486 = vst [vmem:[%s177_s17 + $0x18] sm:$0xff] %v1478_v51 }
 0x678   : > { %1483 = vst [vmem:[%s177_s17] sm:$0xff] %v1475_v62  ;;  %1484 = vst [vmem:[%s177_s17 + $0x8] sm:$0xff] %v1476_v12 }
 0x679   : > { %v1479_v36 = vadd.f32 %v1743_v56, %v1471_v39  ;;  %v1480_v4 = vadd.f32 %v1744_v40, %v1472_v41 }
 0x67a   : > { %v1465_v43 = vpop.permute.xlu1 %1464 }
 0x67b   : > { %1487 = vst [vmem:[%s177_s17 + $0x20] sm:$0xff] %v1479_v36  ;;  %1488 = vst [vmem:[%s177_s17 + $0x28] sm:$0xff] %v1480_v4  ;;  %v1473_v29 = vmul.f32 %v1465_v43, %v2860_v63  ;;  %v1474_v11 = vmul.f32 %v1465_v43, %v2862_v52 }
 0x67d   : > { %v1481_v31 = vadd.f32 %v1745_v38, %v1473_v29  ;;  %v1482_v30 = vadd.f32 %v1746_v20, %v1474_v11 }
 0x67f   : > { %1489 = vst [vmem:[%s177_s17 + $0x30] sm:$0xff] %v1481_v31  ;;  %1490 = vst [vmem:[%s177_s17 + $0x38] sm:$0xff] %v1482_v30 }
 0x680 PF: > { %s13_s12 = sadd.s32 1, %s1753_s12  }
 0x681   : > { %p10_p4 = scmp.ge.s32.totalorder %s13_s12, 4  }
 0x683   :  { %12 = sbr.rel (!%p10_p4) target bundleno = 1 (0x1), region = 62 }

</bundles_post_ra>
